<compile_context>
chip_gen: v7x
topology: tpu7x:2x2x1
jax: 0.10.0
libtpu: 0.0.40
codegen_flags: <defaults>
</compile_context>

<pallas_src>
import math

import jax
import jax.numpy as jnp
from jax import lax
from jax.experimental import pallas as pl
from jax.experimental.pallas import tpu as pltpu

# Per-head layer widths (from Critic.__init__): (sd+ad) -> 500 -> 256 -> 256 -> 64 -> 1
HIDDEN = (500, 256, 256, 64, 1)
N_LAYERS = len(HIDDEN)
# Per-head padded output widths of the 4 hidden layers (500 -> 512 for (8,128) alignment).
HEAD_OUT = (512, 256, 256, 64)
BIAS_COLS = 1024           # bias_hid row layout: head-a at [0:512), head-b at [512:1024)
BIAS_OFF_B = 512
MAX_BATCH_TILE = 1024      # cap on batch rows per grid step


# --------------------------------------------------------------------------
# Parameter construction / packing
# --------------------------------------------------------------------------
def init_raw_params(key, state_dim, action_dim):
    """Two heads of 5 (W [in,out] f32, b [out] f32) layers, nn.Linear-style init."""
    dims = [state_dim + action_dim] + list(HIDDEN)
    heads = []
    for _ in range(2):
        layers = []
        for li in range(N_LAYERS):
            fan_in, fan_out = dims[li], dims[li + 1]
            bound = 1.0 / math.sqrt(fan_in)
            key, kw, kb = jax.random.split(key, 3)
            w = jax.random.uniform(kw, (fan_in, fan_out), jnp.float32, -bound, bound)
            b = jax.random.uniform(kb, (fan_out,), jnp.float32, -bound, bound)
            layers.append((w, b))
        heads.append(layers)
    return heads


def pack_critic_params(heads, state_dim, weight_dtype=jnp.bfloat16):
    """Pack the two heads for the fused kernel.

    Returns (w0s, w0a, w1a, w1b, w2a, w2b, w3a, w3b, w4t, bias_hid, b4_col):
      w0s [sd, 1024], w0a [ad, 1024]  : layer-0 weight, column-packed heads,
                                        row-split into state / action parts.
      w1..w3 (per head)               : dense [512,256], [256,256], [256,64].
      w4t [2, 128]                    : pre-transposed final weight, head-a on
                                        lanes 0:64 (row 0), head-b on 64:128 (row 1).
      bias_hid [4, 1024] f32          : hidden-layer biases, head-a at cols [0:out),
                                        head-b at [512:512+out).
      b4_col [2, 1] f32               : final biases as a column (broadcasts over batch lanes).
    """
    head_a, head_b = heads
    d_in = head_a[0][0].shape[0]
    assert 0 < state_dim < d_in

    def pad2d(w, rows, cols):
        out = jnp.zeros((rows, cols), jnp.float32)
        return out.at[: w.shape[0], : w.shape[1]].set(w)

    # Layer 0: shared input, both heads column-packed, then row-split (fuses torch.cat).
    w0 = jnp.concatenate(
        [pad2d(head_a[0][0], d_in, HEAD_OUT[0]),
         pad2d(head_b[0][0], d_in, HEAD_OUT[0])], axis=1)              # [d_in, 1024]
    w0s = w0[:state_dim].astype(weight_dtype)
    w0a = w0[state_dim:].astype(weight_dtype)

    # Layers 1-3: dense per-head weights (no block-diagonal zeros).
    w1a = pad2d(head_a[1][0], HEAD_OUT[0], HEAD_OUT[1]).astype(weight_dtype)
    w1b = pad2d(head_b[1][0], HEAD_OUT[0], HEAD_OUT[1]).astype(weight_dtype)
    w2a = head_a[2][0].astype(weight_dtype)
    w2b = head_b[2][0].astype(weight_dtype)
    w3a = head_a[3][0].astype(weight_dtype)
    w3b = head_b[3][0].astype(weight_dtype)

    # Layer 4: pre-transposed lane-packed [2, 128].
    w4t = jnp.zeros((2, 2 * HEAD_OUT[3]), jnp.float32)
    w4t = w4t.at[0, : HEAD_OUT[3]].set(head_a[4][0][:, 0])
    w4t = w4t.at[1, HEAD_OUT[3]:].set(head_b[4][0][:, 0])
    w4t = w4t.astype(weight_dtype)

    # Hidden-layer biases (f32).
    bias_hid = jnp.zeros((4, BIAS_COLS), jnp.float32)
    for li in range(4):
        ba, bb = head_a[li][1], head_b[li][1]
        bias_hid = bias_hid.at[li, : ba.shape[0]].set(ba)
        bias_hid = bias_hid.at[li, BIAS_OFF_B:BIAS_OFF_B + bb.shape[0]].set(bb)

    b4_col = jnp.concatenate([head_a[4][1], head_b[4][1]]).reshape(2, 1).astype(jnp.float32)

    return (w0s, w0a, w1a, w1b, w2a, w2b, w3a, w3b, w4t, bias_hid, b4_col)


# --------------------------------------------------------------------------
# Kernel
# --------------------------------------------------------------------------
def _critic_kernel(state_ref, action_ref,
                   w0s_ref, w0a_ref, w1a_ref, w1b_ref, w2a_ref, w2b_ref,
                   w3a_ref, w3b_ref, w4t_ref, bhid_ref, b4_ref, out_ref):
    bf16 = jnp.bfloat16
    f32 = jnp.float32
    s = state_ref[...].astype(bf16)
    a = action_ref[...].astype(bf16)

    # ---- Layer 0: shared input, both heads column-packed -> [tb, 1024].
    # Row-split weight fuses the torch.cat([state, action]) into the matmul.
    z0 = jnp.dot(s, w0s_ref[...], preferred_element_type=f32)
    z0 = z0 + jnp.dot(a, w0a_ref[...], preferred_element_type=f32)
    z0 = z0 + bhid_ref[0:1, :]                       # f32 bias, broadcast over rows
    h0 = jnp.maximum(z0, 0.0).astype(bf16)
    h_a = h0[:, 0:HEAD_OUT[0]]                       # lane-tile aligned (512) slices
    h_b = h0[:, HEAD_OUT[0]:2 * HEAD_OUT[0]]

    # ---- Layers 1-3: per-head dense matmuls (no block-diagonal zero FLOPs).
    per_head_w = ((w1a_ref, w1b_ref), (w2a_ref, w2b_ref), (w3a_ref, w3b_ref))
    for li, (wa_ref, wb_ref) in enumerate(per_head_w, start=1):
        width = HEAD_OUT[li]
        za = jnp.dot(h_a, wa_ref[...], preferred_element_type=f32)
        zb = jnp.dot(h_b, wb_ref[...], preferred_element_type=f32)
        za = za + bhid_ref[li:li + 1, 0:width]
        zb = zb + bhid_ref[li:li + 1, BIAS_OFF_B:BIAS_OFF_B + width]
        h_a = jnp.maximum(za, 0.0).astype(bf16)
        h_b = jnp.maximum(zb, 0.0).astype(bf16)

    # ---- Layer 4: lane-pack the two 64-wide activations and contract against the
    # pre-transposed [2,128] weight so the result is already [2, tb]
    # (batch on lanes -> unmasked, lane-dense store + contiguous output DMA).
    h4 = jnp.concatenate([h_a, h_b], axis=1)                         # [tb, 128] bf16
    q_t = lax.dot_general(w4t_ref[...], h4,
                          dimension_numbers=(((1,), (1,)), ((), ())),
                          preferred_element_type=f32)                # [2, tb]
    out_ref[...] = (q_t + b4_ref[...]).astype(out_ref.dtype)


# --------------------------------------------------------------------------
# Wrapper
# --------------------------------------------------------------------------
def _choose_batch_tile(batch):
    """Batch rows per grid step.

    Small batches run as a single full block.  Larger batches use a 128-aligned
    tile (required for the lane-dense [2, tb] output block) sized so there are
    at least two grid steps (v7x megacore sharding) but at most MAX_BATCH_TILE
    rows (amortizes per-grid-step pipeline overhead on v5e/v6e).
    """
    if batch < 128:
        return batch
    half = pl.cdiv(batch, 2)
    tile = pl.cdiv(half, 128) * 128
    return int(min(MAX_BATCH_TILE, tile))


@jax.jit
def critic_forward(state, action, params):
    """Equivalent of Critic.forward(state, action) -> (q1, q2), each [B, 1]."""
    (w0s, w0a, w1a, w1b, w2a, w2b, w3a, w3b, w4t, bias_hid, b4_col) = params
    state = state.astype(jnp.float32)
    action = action.astype(jnp.float32)
    batch, sd = state.shape
    ad = action.shape[1]

    tb = _choose_batch_tile(batch)
    grid = (pl.cdiv(batch, tb),)          # last block may be partial (masked by Pallas)

    const2d = lambda i: (0, 0)            # weights/biases: resident, fetched once
    row_map = lambda i: (i, 0)
    weights = (w0s, w0a, w1a, w1b, w2a, w2b, w3a, w3b, w4t)
    in_specs = (
        [pl.BlockSpec((tb, sd), row_map), pl.BlockSpec((tb, ad), row_map)]
        + [pl.BlockSpec(w.shape, const2d) for w in weights]
        + [pl.BlockSpec(bias_hid.shape, const2d), pl.BlockSpec(b4_col.shape, const2d)]
    )

    q_t = pl.pallas_call(
        _critic_kernel,
        out_shape=jax.ShapeDtypeStruct((2, batch), jnp.float32),   # row 0 = q1, row 1 = q2
        grid=grid,
        in_specs=in_specs,
        out_specs=pl.BlockSpec((2, tb), lambda i: (0, i)),
        compiler_params=pltpu.CompilerParams(
            dimension_semantics=("parallel",),
            vmem_limit_bytes=64 * 1024 * 1024,    # headroom for the 1024-row tile path
        ),
    )(state, action, *weights, bias_hid, b4_col)

    return q_t[0:1, :].T, q_t[1:2, :].T


# --------------------------------------------------------------------------
# Pure-JAX reference (same bf16 weight / bf16 MXU-input quantization)
# --------------------------------------------------------------------------
def critic_forward_ref(state, action, heads):
    sa = jnp.concatenate([state, action], axis=1).astype(jnp.float32)
    outs = []
    for layers in heads:
        h = sa.astype(jnp.bfloat16)
        for li, (w, b) in enumerate(layers):
            z = jnp.dot(h, w.astype(jnp.bfloat16),
                        preferred_element_type=jnp.float32) + b
            if li < N_LAYERS - 1:
                h = jnp.maximum(z, 0.0).astype(jnp.bfloat16)
            else:
                h = z
        outs.append(h)
    return outs[0], outs[1]


# --------------------------------------------------------------------------
if __name__ == "__main__":
    key = jax.random.PRNGKey(0)
    state_dim, action_dim = 24, 8

    k_params, k_s1, k_a1, k_s2, k_a2 = jax.random.split(key, 5)
    heads = init_raw_params(k_params, state_dim, action_dim)
    params = pack_critic_params(heads, state_dim)

    # --- small batch (single grid step, block == full array) ---
    batch = 2
    state = jax.random.normal(k_s1, (batch, state_dim), jnp.float32)
    action = jax.random.normal(k_a1, (batch, action_dim), jnp.float32)

    q1, q2 = critic_forward(state, action, params)
    jax.block_until_ready((q1, q2))
    r1, r2 = critic_forward_ref(state, action, heads)
    assert q1.shape == (batch, 1) and q2.shape == (batch, 1)
    assert jnp.allclose(q1, r1, atol=2e-3, rtol=2e-3)
    assert jnp.allclose(q2, r2, atol=2e-3, rtol=2e-3)

    # --- larger batch (multi-step parallel grid + masked non-dividing last block) ---
    batch2 = 300
    state2 = jax.random.normal(k_s2, (batch2, state_dim), jnp.float32)
    action2 = jax.random.normal(k_a2, (batch2, action_dim), jnp.float32)

    q1b, q2b = critic_forward(state2, action2, params)
    jax.block_until_ready((q1b, q2b))
    r1b, r2b = critic_forward_ref(state2, action2, heads)
    assert q1b.shape == (batch2, 1) and q2b.shape == (batch2, 1)
    assert jnp.allclose(q1b, r1b, atol=2e-3, rtol=2e-3)
    assert jnp.allclose(q2b, r2b, atol=2e-3, rtol=2e-3)

    print("KERNEL_OK")
</pallas_src>

<mosaic_0001>
module attributes {stable_mosaic.version = 11 : i64} {
  func.func @_critic_kernel(%arg0: i32, %arg1: memref<2x24xf32, #tpu.memory_space<vmem>>, %arg2: memref<2x8xf32, #tpu.memory_space<vmem>>, %arg3: memref<24x1024xbf16, #tpu.memory_space<vmem>>, %arg4: memref<8x1024xbf16, #tpu.memory_space<vmem>>, %arg5: memref<512x256xbf16, #tpu.memory_space<vmem>>, %arg6: memref<512x256xbf16, #tpu.memory_space<vmem>>, %arg7: memref<256x256xbf16, #tpu.memory_space<vmem>>, %arg8: memref<256x256xbf16, #tpu.memory_space<vmem>>, %arg9: memref<256x64xbf16, #tpu.memory_space<vmem>>, %arg10: memref<256x64xbf16, #tpu.memory_space<vmem>>, %arg11: memref<2x128xbf16, #tpu.memory_space<vmem>>, %arg12: memref<4x1024xf32, #tpu.memory_space<vmem>>, %arg13: memref<2x1xf32, #tpu.memory_space<vmem>>, %arg14: memref<2x2xf32, #tpu.memory_space<vmem>>) attributes {dimension_semantics = [#tpu.dimension_semantics<parallel>], iteration_bounds = array<i64: 1>, scalar_prefetch = 0 : i64, scratch_operands = 0 : i64, tpu.core_type = #tpu.core_type<tc>, window_params = [{transform_indices = @transform_0, window_bounds = array<i64: 2, 24>}, {transform_indices = @transform_1, window_bounds = array<i64: 2, 8>}, {pipeline_mode = #tpu.pipeline_mode<synchronous>, transform_indices = @transform_2, window_bounds = array<i64: 24, 1024>}, {pipeline_mode = #tpu.pipeline_mode<synchronous>, transform_indices = @transform_3, window_bounds = array<i64: 8, 1024>}, {pipeline_mode = #tpu.pipeline_mode<synchronous>, transform_indices = @transform_4, window_bounds = array<i64: 512, 256>}, {pipeline_mode = #tpu.pipeline_mode<synchronous>, transform_indices = @transform_5, window_bounds = array<i64: 512, 256>}, {pipeline_mode = #tpu.pipeline_mode<synchronous>, transform_indices = @transform_6, window_bounds = array<i64: 256, 256>}, {pipeline_mode = #tpu.pipeline_mode<synchronous>, transform_indices = @transform_7, window_bounds = array<i64: 256, 256>}, {pipeline_mode = #tpu.pipeline_mode<synchronous>, transform_indices = @transform_8, window_bounds = array<i64: 256, 64>}, {pipeline_mode = #tpu.pipeline_mode<synchronous>, transform_indices = @transform_9, window_bounds = array<i64: 256, 64>}, {pipeline_mode = #tpu.pipeline_mode<synchronous>, transform_indices = @transform_10, window_bounds = array<i64: 2, 128>}, {pipeline_mode = #tpu.pipeline_mode<synchronous>, transform_indices = @transform_11, window_bounds = array<i64: 4, 1024>}, {pipeline_mode = #tpu.pipeline_mode<synchronous>, transform_indices = @transform_12, window_bounds = array<i64: 2, 1>}, {transform_indices = @transform_13, window_bounds = array<i64: 2, 2>}]} {
    %c0 = arith.constant 0 : index
    %c0_0 = arith.constant 0 : index
    %0 = vector.load %arg1[%c0, %c0_0] : memref<2x24xf32, #tpu.memory_space<vmem>>, vector<2x24xf32>
    %1 = arith.truncf %0 : vector<2x24xf32> to vector<2x24xbf16>
    %c0_1 = arith.constant 0 : index
    %c0_2 = arith.constant 0 : index
    %2 = vector.load %arg2[%c0_1, %c0_2] : memref<2x8xf32, #tpu.memory_space<vmem>>, vector<2x8xf32>
    %3 = arith.truncf %2 : vector<2x8xf32> to vector<2x8xbf16>
    %c0_3 = arith.constant 0 : index
    %c0_4 = arith.constant 0 : index
    %4 = vector.load %arg3[%c0_3, %c0_4] : memref<24x1024xbf16, #tpu.memory_space<vmem>>, vector<24x1024xbf16>
    %cst = arith.constant dense<0.000000e+00> : vector<2x1024xf32>
    %5 = tpu.matmul %1, %4, %cst {dimension_numbers = #tpu.dot_dimension_numbers<[1], [0], [0], [1], [0, 0, 1, 1], [], []>} : vector<2x24xbf16>, vector<24x1024xbf16>, vector<2x1024xf32> -> vector<2x1024xf32>
    %c0_5 = arith.constant 0 : index
    %c0_6 = arith.constant 0 : index
    %6 = vector.load %arg4[%c0_5, %c0_6] : memref<8x1024xbf16, #tpu.memory_space<vmem>>, vector<8x1024xbf16>
    %cst_7 = arith.constant dense<0.000000e+00> : vector<2x1024xf32>
    %7 = tpu.matmul %3, %6, %cst_7 {dimension_numbers = #tpu.dot_dimension_numbers<[1], [0], [0], [1], [0, 0, 1, 1], [], []>} : vector<2x8xbf16>, vector<8x1024xbf16>, vector<2x1024xf32> -> vector<2x1024xf32>
    %8 = arith.addf %5, %7 : vector<2x1024xf32>
    %c0_8 = arith.constant 0 : index
    %c0_9 = arith.constant 0 : index
    %9 = vector.load %arg12[%c0_8, %c0_9] : memref<4x1024xf32, #tpu.memory_space<vmem>>, vector<1x1024xf32>
    %10 = vector.broadcast %9 : vector<1x1024xf32> to vector<2x1024xf32>
    %11 = arith.addf %8, %10 : vector<2x1024xf32>
    %cst_10 = arith.constant 0.000000e+00 : f32
    %12 = vector.broadcast %cst_10 : f32 to vector<2x1024xf32>
    %13 = arith.maximumf %11, %12 : vector<2x1024xf32>
    %14 = arith.truncf %13 : vector<2x1024xf32> to vector<2x1024xbf16>
    %15 = vector.extract_strided_slice %14 {offsets = [0, 0], sizes = [2, 512], strides = [1, 1]} : vector<2x1024xbf16> to vector<2x512xbf16>
    %16 = vector.extract_strided_slice %14 {offsets = [0, 512], sizes = [2, 512], strides = [1, 1]} : vector<2x1024xbf16> to vector<2x512xbf16>
    %c0_11 = arith.constant 0 : index
    %c0_12 = arith.constant 0 : index
    %17 = vector.load %arg5[%c0_11, %c0_12] : memref<512x256xbf16, #tpu.memory_space<vmem>>, vector<512x256xbf16>
    %cst_13 = arith.constant dense<0.000000e+00> : vector<2x256xf32>
    %18 = tpu.matmul %15, %17, %cst_13 {dimension_numbers = #tpu.dot_dimension_numbers<[1], [0], [0], [1], [0, 0, 1, 1], [], []>} : vector<2x512xbf16>, vector<512x256xbf16>, vector<2x256xf32> -> vector<2x256xf32>
    %c0_14 = arith.constant 0 : index
    %c0_15 = arith.constant 0 : index
    %19 = vector.load %arg6[%c0_14, %c0_15] : memref<512x256xbf16, #tpu.memory_space<vmem>>, vector<512x256xbf16>
    %cst_16 = arith.constant dense<0.000000e+00> : vector<2x256xf32>
    %20 = tpu.matmul %16, %19, %cst_16 {dimension_numbers = #tpu.dot_dimension_numbers<[1], [0], [0], [1], [0, 0, 1, 1], [], []>} : vector<2x512xbf16>, vector<512x256xbf16>, vector<2x256xf32> -> vector<2x256xf32>
    %c1 = arith.constant 1 : index
    %c0_17 = arith.constant 0 : index
    %21 = vector.load %arg12[%c1, %c0_17] : memref<4x1024xf32, #tpu.memory_space<vmem>>, vector<1x256xf32>
    %22 = vector.broadcast %21 : vector<1x256xf32> to vector<2x256xf32>
    %23 = arith.addf %18, %22 : vector<2x256xf32>
    %c1_18 = arith.constant 1 : index
    %c512 = arith.constant 512 : index
    %24 = vector.load %arg12[%c1_18, %c512] : memref<4x1024xf32, #tpu.memory_space<vmem>>, vector<1x256xf32>
    %25 = vector.broadcast %24 : vector<1x256xf32> to vector<2x256xf32>
    %26 = arith.addf %20, %25 : vector<2x256xf32>
    %cst_19 = arith.constant 0.000000e+00 : f32
    %27 = vector.broadcast %cst_19 : f32 to vector<2x256xf32>
    %28 = arith.maximumf %23, %27 : vector<2x256xf32>
    %29 = arith.truncf %28 : vector<2x256xf32> to vector<2x256xbf16>
    %cst_20 = arith.constant 0.000000e+00 : f32
    %30 = vector.broadcast %cst_20 : f32 to vector<2x256xf32>
    %31 = arith.maximumf %26, %30 : vector<2x256xf32>
    %32 = arith.truncf %31 : vector<2x256xf32> to vector<2x256xbf16>
    %c0_21 = arith.constant 0 : index
    %c0_22 = arith.constant 0 : index
    %33 = vector.load %arg7[%c0_21, %c0_22] : memref<256x256xbf16, #tpu.memory_space<vmem>>, vector<256x256xbf16>
    %cst_23 = arith.constant dense<0.000000e+00> : vector<2x256xf32>
    %34 = tpu.matmul %29, %33, %cst_23 {dimension_numbers = #tpu.dot_dimension_numbers<[1], [0], [0], [1], [0, 0, 1, 1], [], []>} : vector<2x256xbf16>, vector<256x256xbf16>, vector<2x256xf32> -> vector<2x256xf32>
    %c0_24 = arith.constant 0 : index
    %c0_25 = arith.constant 0 : index
    %35 = vector.load %arg8[%c0_24, %c0_25] : memref<256x256xbf16, #tpu.memory_space<vmem>>, vector<256x256xbf16>
    %cst_26 = arith.constant dense<0.000000e+00> : vector<2x256xf32>
    %36 = tpu.matmul %32, %35, %cst_26 {dimension_numbers = #tpu.dot_dimension_numbers<[1], [0], [0], [1], [0, 0, 1, 1], [], []>} : vector<2x256xbf16>, vector<256x256xbf16>, vector<2x256xf32> -> vector<2x256xf32>
    %c2 = arith.constant 2 : index
    %c0_27 = arith.constant 0 : index
    %37 = vector.load %arg12[%c2, %c0_27] : memref<4x1024xf32, #tpu.memory_space<vmem>>, vector<1x256xf32>
    %38 = vector.broadcast %37 : vector<1x256xf32> to vector<2x256xf32>
    %39 = arith.addf %34, %38 : vector<2x256xf32>
    %c2_28 = arith.constant 2 : index
    %c512_29 = arith.constant 512 : index
    %40 = vector.load %arg12[%c2_28, %c512_29] : memref<4x1024xf32, #tpu.memory_space<vmem>>, vector<1x256xf32>
    %41 = vector.broadcast %40 : vector<1x256xf32> to vector<2x256xf32>
    %42 = arith.addf %36, %41 : vector<2x256xf32>
    %cst_30 = arith.constant 0.000000e+00 : f32
    %43 = vector.broadcast %cst_30 : f32 to vector<2x256xf32>
    %44 = arith.maximumf %39, %43 : vector<2x256xf32>
    %45 = arith.truncf %44 : vector<2x256xf32> to vector<2x256xbf16>
    %cst_31 = arith.constant 0.000000e+00 : f32
    %46 = vector.broadcast %cst_31 : f32 to vector<2x256xf32>
    %47 = arith.maximumf %42, %46 : vector<2x256xf32>
    %48 = arith.truncf %47 : vector<2x256xf32> to vector<2x256xbf16>
    %c0_32 = arith.constant 0 : index
    %c0_33 = arith.constant 0 : index
    %49 = vector.load %arg9[%c0_32, %c0_33] : memref<256x64xbf16, #tpu.memory_space<vmem>>, vector<256x64xbf16>
    %cst_34 = arith.constant dense<0.000000e+00> : vector<2x64xf32>
    %50 = tpu.matmul %45, %49, %cst_34 {dimension_numbers = #tpu.dot_dimension_numbers<[1], [0], [0], [1], [0, 0, 1, 1], [], []>} : vector<2x256xbf16>, vector<256x64xbf16>, vector<2x64xf32> -> vector<2x64xf32>
    %c0_35 = arith.constant 0 : index
    %c0_36 = arith.constant 0 : index
    %51 = vector.load %arg10[%c0_35, %c0_36] : memref<256x64xbf16, #tpu.memory_space<vmem>>, vector<256x64xbf16>
    %cst_37 = arith.constant dense<0.000000e+00> : vector<2x64xf32>
    %52 = tpu.matmul %48, %51, %cst_37 {dimension_numbers = #tpu.dot_dimension_numbers<[1], [0], [0], [1], [0, 0, 1, 1], [], []>} : vector<2x256xbf16>, vector<256x64xbf16>, vector<2x64xf32> -> vector<2x64xf32>
    %c3 = arith.constant 3 : index
    %c0_38 = arith.constant 0 : index
    %53 = vector.load %arg12[%c3, %c0_38] : memref<4x1024xf32, #tpu.memory_space<vmem>>, vector<1x64xf32>
    %54 = vector.broadcast %53 : vector<1x64xf32> to vector<2x64xf32>
    %55 = arith.addf %50, %54 : vector<2x64xf32>
    %c3_39 = arith.constant 3 : index
    %c512_40 = arith.constant 512 : index
    %56 = vector.load %arg12[%c3_39, %c512_40] : memref<4x1024xf32, #tpu.memory_space<vmem>>, vector<1x64xf32>
    %57 = vector.broadcast %56 : vector<1x64xf32> to vector<2x64xf32>
    %58 = arith.addf %52, %57 : vector<2x64xf32>
    %cst_41 = arith.constant 0.000000e+00 : f32
    %59 = vector.broadcast %cst_41 : f32 to vector<2x64xf32>
    %60 = arith.maximumf %55, %59 : vector<2x64xf32>
    %61 = arith.truncf %60 : vector<2x64xf32> to vector<2x64xbf16>
    %cst_42 = arith.constant 0.000000e+00 : f32
    %62 = vector.broadcast %cst_42 : f32 to vector<2x64xf32>
    %63 = arith.maximumf %58, %62 : vector<2x64xf32>
    %64 = arith.truncf %63 : vector<2x64xf32> to vector<2x64xbf16>
    %65 = tpu.concatenate %61, %64 in 1 : vector<2x64xbf16>, vector<2x64xbf16> -> vector<2x128xbf16>
    %c0_43 = arith.constant 0 : index
    %c0_44 = arith.constant 0 : index
    %66 = vector.load %arg11[%c0_43, %c0_44] : memref<2x128xbf16, #tpu.memory_space<vmem>>, vector<2x128xbf16>
    %cst_45 = arith.constant dense<0.000000e+00> : vector<2x2xf32>
    %67 = tpu.matmul %66, %65, %cst_45 {dimension_numbers = #tpu.dot_dimension_numbers<[1], [1], [0], [0], [0, 0, 1, 0], [], []>} : vector<2x128xbf16>, vector<2x128xbf16>, vector<2x2xf32> -> vector<2x2xf32>
    %c0_46 = arith.constant 0 : index
    %c0_47 = arith.constant 0 : index
    %68 = vector.load %arg13[%c0_46, %c0_47] : memref<2x1xf32, #tpu.memory_space<vmem>>, vector<2x1xf32>
    %69 = vector.broadcast %68 : vector<2x1xf32> to vector<2x2xf32>
    %70 = arith.addf %67, %69 : vector<2x2xf32>
    %c0_48 = arith.constant 0 : index
    %c0_49 = arith.constant 0 : index
    %71 = vector.load %arg14[%c0_48, %c0_49] : memref<2x2xf32, #tpu.memory_space<vmem>>, vector<2x2xf32>
    tpu.vector_store %arg14[%c0_48, %c0_49], %70 {strides = array<i32>} : memref<2x2xf32, #tpu.memory_space<vmem>>, vector<2x2xf32>,
    return
  }
  func.func @transform_0(%arg0: i32) -> (i32, i32) {
    %c0_i32 = arith.constant 0 : i32
    %c0_i32_0 = arith.constant 0 : i32
    return %arg0, %c0_i32 : i32, i32
  }
  func.func @transform_1(%arg0: i32) -> (i32, i32) {
    %c0_i32 = arith.constant 0 : i32
    %c0_i32_0 = arith.constant 0 : i32
    return %arg0, %c0_i32 : i32, i32
  }
  func.func @transform_2(%arg0: i32) -> (i32, i32) {
    %c0_i32 = arith.constant 0 : i32
    %c0_i32_0 = arith.constant 0 : i32
    %c0_i32_1 = arith.constant 0 : i32
    return %c0_i32, %c0_i32_0 : i32, i32
  }
  func.func @transform_3(%arg0: i32) -> (i32, i32) {
    %c0_i32 = arith.constant 0 : i32
    %c0_i32_0 = arith.constant 0 : i32
    %c0_i32_1 = arith.constant 0 : i32
    return %c0_i32, %c0_i32_0 : i32, i32
  }
  func.func @transform_4(%arg0: i32) -> (i32, i32) {
    %c0_i32 = arith.constant 0 : i32
    %c0_i32_0 = arith.constant 0 : i32
    %c0_i32_1 = arith.constant 0 : i32
    return %c0_i32, %c0_i32_0 : i32, i32
  }
  func.func @transform_5(%arg0: i32) -> (i32, i32) {
    %c0_i32 = arith.constant 0 : i32
    %c0_i32_0 = arith.constant 0 : i32
    %c0_i32_1 = arith.constant 0 : i32
    return %c0_i32, %c0_i32_0 : i32, i32
  }
  func.func @transform_6(%arg0: i32) -> (i32, i32) {
    %c0_i32 = arith.constant 0 : i32
    %c0_i32_0 = arith.constant 0 : i32
    %c0_i32_1 = arith.constant 0 : i32
    return %c0_i32, %c0_i32_0 : i32, i32
  }
  func.func @transform_7(%arg0: i32) -> (i32, i32) {
    %c0_i32 = arith.constant 0 : i32
    %c0_i32_0 = arith.constant 0 : i32
    %c0_i32_1 = arith.constant 0 : i32
    return %c0_i32, %c0_i32_0 : i32, i32
  }
  func.func @transform_8(%arg0: i32) -> (i32, i32) {
    %c0_i32 = arith.constant 0 : i32
    %c0_i32_0 = arith.constant 0 : i32
    %c0_i32_1 = arith.constant 0 : i32
    return %c0_i32, %c0_i32_0 : i32, i32
  }
  func.func @transform_9(%arg0: i32) -> (i32, i32) {
    %c0_i32 = arith.constant 0 : i32
    %c0_i32_0 = arith.constant 0 : i32
    %c0_i32_1 = arith.constant 0 : i32
    return %c0_i32, %c0_i32_0 : i32, i32
  }
  func.func @transform_10(%arg0: i32) -> (i32, i32) {
    %c0_i32 = arith.constant 0 : i32
    %c0_i32_0 = arith.constant 0 : i32
    %c0_i32_1 = arith.constant 0 : i32
    return %c0_i32, %c0_i32_0 : i32, i32
  }
  func.func @transform_11(%arg0: i32) -> (i32, i32) {
    %c0_i32 = arith.constant 0 : i32
    %c0_i32_0 = arith.constant 0 : i32
    %c0_i32_1 = arith.constant 0 : i32
    return %c0_i32, %c0_i32_0 : i32, i32
  }
  func.func @transform_12(%arg0: i32) -> (i32, i32) {
    %c0_i32 = arith.constant 0 : i32
    %c0_i32_0 = arith.constant 0 : i32
    %c0_i32_1 = arith.constant 0 : i32
    return %c0_i32, %c0_i32_0 : i32, i32
  }
  func.func @transform_13(%arg0: i32) -> (i32, i32) {
    %c0_i32 = arith.constant 0 : i32
    %c0_i32_0 = arith.constant 0 : i32
    return %c0_i32, %arg0 : i32, i32
  }
}

</mosaic_0001>

<bundles_post_ra>
// kernel: critic_forward.1
= control target key start
LH: loop header
LB: loop body
LE: loop exit
PB: predicated region body
PF: predicated region fallthrough
CT: control target
= control target key end

     0   :  { %18 = vsyncpa [#allocation3], 0  ;;  %s4046_s0 = inlined_call_operand.hbm [shape: f32[2,24], index: 0, kind: input, shape index: {}]   ;;  %s4047_s1 = inlined_call_operand.hbm [shape: f32[2,8], index: 1, kind: input, shape index: {}]   ;;  %s4048_s2 = inlined_call_operand.hbm [shape: bf16[24,1024], index: 2, kind: input, shape index: {}]   ;;  %s4049_s3 = inlined_call_operand.hbm [shape: bf16[8,1024], index: 3, kind: input, shape index: {}]   ;;  %s4050_s4 = inlined_call_operand.hbm [shape: bf16[512,256], index: 4, kind: input, shape index: {}]   ;;  %s4051_s5 = inlined_call_operand.hbm [shape: bf16[512,256], index: 5, kind: input, shape index: {}]   ;;  %s4052_s6 = inlined_call_operand.hbm [shape: bf16[256,256], index: 6, kind: input, shape index: {}]   ;;  %s4053_s7 = inlined_call_operand.hbm [shape: bf16[256,256], index: 7, kind: input, shape index: {}]   ;;  %s4054_s8 = inlined_call_operand.hbm [shape: bf16[256,64], index: 8, kind: input, shape index: {}]   ;;  %s4055_s9 = inlined_call_operand.hbm [shape: bf16[256,64], index: 9, kind: input, shape index: {}]   ;;  %s4056_s10 = inlined_call_operand.hbm [shape: bf16[2,128], index: 10, kind: input, shape index: {}]   ;;  %s4057_s11 = inlined_call_operand.hbm [shape: f32[4,1024], index: 11, kind: input, shape index: {}]   ;;  %s4058_s12 = inlined_call_operand.hbm [shape: f32[2,1], index: 12, kind: input, shape index: {}]   ;;  %s4059_s13 = inlined_call_operand.hbm [shape: f32[2,2], index: 13, kind: output, shape index: {}]  }
   0x1   :  { %19 = vsyncpa [#allocation6], 0 }
   0x2   :  { %20 = vsyncpa [#allocation9], 0 }
   0x3   :  { %21 = vsyncpa [#allocation12], 0 }
   0x4   :  { %22 = vsyncpa [#allocation15], 0 }
   0x5   :  { %23 = vsyncpa [#allocation18], 0 }
   0x6   :  { %24 = vsyncpa [#allocation21], 0 }
   0x7   :  { %25 = vsyncpa [#allocation4], 0  ;;  %s3669_s25 = smov [#allocation5]   ;;  %s3670_s27 = smov [#allocation8]  }
   0x8   :  { %s42_s26 = sshll.u32 %s3669_s25, 4  ;;  %s64_s28 = sshll.u32 %s3670_s27, 4  ;;  %s43_s26 = int_to_ptr.vmem [resolvable:$true] %s42_s26  ;;  %s65_s28 = int_to_ptr.vmem [resolvable:$true] %s64_s28 }
   0x9   :  { %s3345_s14 = scalar_lea.hbm %s4047_s1, 32 }
   0xa   :  { %p3346_p0 = scmp.ne.s32.totalorder %s4047_s1, %s3345_s14  ;;  %p3349_p1 = scmp.lt.u32.totalorder %s3345_s14, %s4047_s1 }
   0xc   :  { %p3351_p2 = pnand %p3349_p1, %p3346_p0 }
   0xe   :  { %3354 = shalt.err (!%p3351_p2)
}
   0xf   :  { %s3355_s19 = scalar_lea.vmem %s43_s26, 32  ;;  %p3360_p4 = scmp.lt.s32.totalorder %s43_s26, %s43_s26 }
  0x10   :  { %p3356_p3 = scmp.ne.s32.totalorder %s43_s26, %s3355_s19  ;;  %p3361_p5 = scmp.lt.s32.totalorder %s3355_s19, %s3355_s19 }
  0x12   :  { %p3362_p6 = por %p3361_p5, %p3360_p4 }
  0x14   :  { %p3363_p7 = pnand %p3362_p6, %p3356_p3 }
  0x16   :  { %3366 = shalt.err (!%p3363_p7)
}
  0x17   :  { %45 = dma.hbm_to_vmem [thread:$0]  %s4047_s1, 32, %s43_s26, [#allocation6]  }
  0x18   :  { %s3367_s24 = scalar_lea.hbm %s4049_s3, 512 }
  0x19   :  { %p3368_p8 = scmp.ne.s32.totalorder %s4049_s3, %s3367_s24  ;;  %p3371_p9 = scmp.lt.u32.totalorder %s3367_s24, %s4049_s3 }
  0x1b   :  { %p3373_p10 = pnand %p3371_p9, %p3368_p8 }
  0x1d   :  { %3376 = shalt.err (!%p3373_p10)
}
  0x1e   :  { %s3377_s14 = scalar_lea.vmem %s65_s28, 512  ;;  %p3382_p12 = scmp.lt.s32.totalorder %s65_s28, %s65_s28 }
  0x1f   :  { %p3378_p11 = scmp.ne.s32.totalorder %s65_s28, %s3377_s14  ;;  %p3383_p13 = scmp.lt.s32.totalorder %s3377_s14, %s3377_s14 }
  0x21   :  { %p3384_p0 = por %p3383_p13, %p3382_p12 }
  0x23   :  { %p3385_p1 = pnand %p3384_p0, %p3378_p11 }
  0x25   :  { %3388 = shalt.err (!%p3385_p1)
}
  0x26   :  { %67 = dma.hbm_to_vmem [thread:$0]  %s4049_s3, 512, %s65_s28, [#allocation9]  }
  0x27   :  { %s3671_s15 = smov [#allocation11]   ;;  %s3672_s17 = smov [#allocation14]  }
  0x28   :  { %s85_s16 = sshll.u32 %s3671_s15, 4  ;;  %s109_s18 = sshll.u32 %s3672_s17, 4  ;;  %s86_s16 = int_to_ptr.vmem [resolvable:$true] %s85_s16  ;;  %s3786_s18 = int_to_ptr.vmem [resolvable:$true] %s109_s18 }
  0x29   :  { %s3389_s21 = scalar_lea.hbm %s4051_s5, 8192 }
  0x2a   :  { %p3390_p2 = scmp.ne.s32.totalorder %s4051_s5, %s3389_s21  ;;  %p3393_p3 = scmp.lt.u32.totalorder %s3389_s21, %s4051_s5 }
  0x2c   :  { %p3395_p4 = pnand %p3393_p3, %p3390_p2 }
  0x2e   :  { %3398 = shalt.err (!%p3395_p4)
}
  0x2f   :  { %s3399_s3 = scalar_lea.vmem %s86_s16, 8192  ;;  %p3404_p6 = scmp.lt.s32.totalorder %s86_s16, %s86_s16 }
  0x30   :  { %p3400_p5 = scmp.ne.s32.totalorder %s86_s16, %s3399_s3  ;;  %p3405_p7 = scmp.lt.s32.totalorder %s3399_s3, %s3399_s3 }
  0x32   :  { %p3406_p8 = por %p3405_p7, %p3404_p6 }
  0x34   :  { %p3407_p9 = pnand %p3406_p8, %p3400_p5 }
  0x36   :  { %3410 = shalt.err (!%p3407_p9)
}
  0x37   :  { %s3673_s28 = smov 128   ;;  %s3674_s27 = smov 8  }
  0x38   :  { %91 = dma.hbm_to_vmem [thread:$0]  %s4051_s5, 8192, %s86_s16, [#allocation12], %s3673_s28, %s3673_s28, %s3674_s27  }
  0x39   :  { %s3411_s26 = scalar_lea.hbm %s4053_s7, 4096 }
  0x3a   :  { %p3412_p10 = scmp.ne.s32.totalorder %s4053_s7, %s3411_s26  ;;  %p3415_p11 = scmp.lt.u32.totalorder %s3411_s26, %s4053_s7 }
  0x3c   :  { %p3417_p12 = pnand %p3415_p11, %p3412_p10 }
  0x3e   :  { %3420 = shalt.err (!%p3417_p12)
}
  0x3f   :  { %s3421_s21 = scalar_lea.vmem %s3786_s18, 4096  ;;  %p3426_p0 = scmp.lt.s32.totalorder %s3786_s18, %s3786_s18 }
  0x40   :  { %p3422_p13 = scmp.ne.s32.totalorder %s3786_s18, %s3421_s21  ;;  %p3427_p1 = scmp.lt.s32.totalorder %s3421_s21, %s3421_s21 }
  0x42   :  { %p3428_p2 = por %p3427_p1, %p3426_p0 }
  0x44   :  { %p3429_p3 = pnand %p3428_p2, %p3422_p13 }
  0x46   :  { %3432 = shalt.err (!%p3429_p3)
}
  0x47   :  { %115 = dma.hbm_to_vmem [thread:$0]  %s4053_s7, 4096, %s3786_s18, [#allocation15], %s3673_s28, %s3673_s28, %s3674_s27  }
  0x48   :  { %s3675_s22 = smov [#allocation17]   ;;  %s3676_s24 = smov [#allocation20]  }
  0x49   :  { %s133_s23 = sshll.u32 %s3675_s22, 4  ;;  %s156_s25 = sshll.u32 %s3676_s24, 4  ;;  %s134_s23 = int_to_ptr.vmem [resolvable:$true] %s133_s23  ;;  %s157_s25 = int_to_ptr.vmem [resolvable:$true] %s156_s25 }
  0x4a   :  { %s3433_s30 = scalar_lea.hbm %s4055_s9, 2048 }
  0x4b   :  { %p3434_p4 = scmp.ne.s32.totalorder %s4055_s9, %s3433_s30  ;;  %p3437_p5 = scmp.lt.u32.totalorder %s3433_s30, %s4055_s9 }
  0x4d   :  { %p3439_p6 = pnand %p3437_p5, %p3434_p4 }
  0x4f   :  { %3442 = shalt.err (!%p3439_p6)
}
  0x50   :  { %s3443_s7 = scalar_lea.vmem %s134_s23, 2048  ;;  %p3448_p8 = scmp.lt.s32.totalorder %s134_s23, %s134_s23 }
  0x51   :  { %p3444_p7 = scmp.ne.s32.totalorder %s134_s23, %s3443_s7  ;;  %p3449_p9 = scmp.lt.s32.totalorder %s3443_s7, %s3443_s7 }
  0x53   :  { %p3450_p10 = por %p3449_p9, %p3448_p8 }
  0x55   :  { %p3451_p11 = pnand %p3450_p10, %p3444_p7 }
  0x57   :  { %3454 = shalt.err (!%p3451_p11)
}
  0x58   :  { %s3677_s18 = smov 64   ;;  %s3678_s17 = smov 4  }
  0x59   :  { %139 = dma.hbm_to_vmem [thread:$0]  %s4055_s9, 2048, %s134_s23, [#allocation18], %s3677_s18, %s3677_s18, %s3678_s17  }
  0x5a   :  { %s3455_s16 = scalar_lea.hbm %s4057_s11, 512 }
  0x5b   :  { %p3456_p12 = scmp.ne.s32.totalorder %s4057_s11, %s3455_s16  ;;  %p3459_p13 = scmp.lt.u32.totalorder %s3455_s16, %s4057_s11 }
  0x5d   :  { %p3461_p0 = pnand %p3459_p13, %p3456_p12 }
  0x5f   :  { %3464 = shalt.err (!%p3461_p0)
}
  0x60   :  { %s3465_s30 = scalar_lea.vmem %s157_s25, 512  ;;  %p3470_p2 = scmp.lt.s32.totalorder %s157_s25, %s157_s25 }
  0x61   :  { %p3466_p1 = scmp.ne.s32.totalorder %s157_s25, %s3465_s30  ;;  %p3471_p3 = scmp.lt.s32.totalorder %s3465_s30, %s3465_s30 }
  0x63   :  { %p3472_p4 = por %p3471_p3, %p3470_p2 }
  0x65   :  { %p3473_p5 = pnand %p3472_p4, %p3466_p1 }
  0x67   :  { %3476 = shalt.err (!%p3473_p5)
}
  0x68   :  { %159 = dma.hbm_to_vmem [thread:$0]  %s4057_s11, 512, %s157_s25, [#allocation21]  }
  0x69   :  { %s3679_s14 = smov [#allocation2]   ;;  %s3680_s26 = smov [#allocation7]  }
  0x6a   :  { %s32_s1 = sshll.u32 %s3679_s14, 4  ;;  %s51_s15 = sshll.u32 %s3680_s26, 4  ;;  %s33_s1 = int_to_ptr.vmem [resolvable:$true] %s32_s1  ;;  %s3850_s15 = int_to_ptr.vmem [resolvable:$true] %s51_s15 }
  0x6b   :  { %s3477_s20 = scalar_lea.hbm %s4046_s0, 32 }
  0x6c   :  { %p3478_p6 = scmp.ne.s32.totalorder %s4046_s0, %s3477_s20  ;;  %p3481_p7 = scmp.lt.u32.totalorder %s3477_s20, %s4046_s0 }
  0x6e   :  { %p3483_p8 = pnand %p3481_p7, %p3478_p6 }
  0x70   :  { %3486 = shalt.err (!%p3483_p8)
}
  0x71   :  { %s3487_s11 = scalar_lea.vmem %s33_s1, 32  ;;  %p3492_p10 = scmp.lt.s32.totalorder %s33_s1, %s33_s1 }
  0x72   :  { %p3488_p9 = scmp.ne.s32.totalorder %s33_s1, %s3487_s11  ;;  %p3493_p11 = scmp.lt.s32.totalorder %s3487_s11, %s3487_s11 }
  0x74   :  { %p3494_p12 = por %p3493_p11, %p3492_p10 }
  0x76   :  { %p3495_p13 = pnand %p3494_p12, %p3488_p9 }
  0x78   :  { %3498 = shalt.err (!%p3495_p13)
}
  0x79   :  { %35 = dma.hbm_to_vmem [thread:$0]  %s4046_s0, 32, %s33_s1, [#allocation3]  }
  0x7a   :  { %s3499_s30 = scalar_lea.hbm %s4048_s2, 1536 }
  0x7b   :  { %p3500_p0 = scmp.ne.s32.totalorder %s4048_s2, %s3499_s30  ;;  %p3503_p1 = scmp.lt.u32.totalorder %s3499_s30, %s4048_s2 }
  0x7d   :  { %p3505_p2 = pnand %p3503_p1, %p3500_p0 }
  0x7f   :  { %3508 = shalt.err (!%p3505_p2)
}
  0x80   :  { %s3509_s7 = scalar_lea.vmem %s3850_s15, 1536  ;;  %p3514_p4 = scmp.lt.s32.totalorder %s3850_s15, %s3850_s15 }
  0x81   :  { %p3510_p3 = scmp.ne.s32.totalorder %s3850_s15, %s3509_s7  ;;  %p3515_p5 = scmp.lt.s32.totalorder %s3509_s7, %s3509_s7 }
  0x83   :  { %p3516_p6 = por %p3515_p5, %p3514_p4 }
  0x85   :  { %p3517_p7 = pnand %p3516_p6, %p3510_p3 }
  0x87   :  { %3520 = shalt.err (!%p3517_p7)
}
  0x88   :  { %s3681_s0 = smov 512   ;;  %s3682_s1 = smov 32  }
  0x89   :  { %57 = dma.hbm_to_vmem [thread:$0]  %s4048_s2, 1536, %s3850_s15, [#allocation6], %s3681_s0, %s3681_s0, %s3682_s1  }
  0x8a   :  { %s3683_s21 = smov [#allocation10]   ;;  %s3684_s16 = smov [#allocation13]  }
  0x8b   :  { %s73_s5 = sshll.u32 %s3683_s21, 4  ;;  %s97_s22 = sshll.u32 %s3684_s16, 4  ;;  %s74_s5 = int_to_ptr.vmem [resolvable:$true] %s73_s5  ;;  %s3881_s22 = int_to_ptr.vmem [resolvable:$true] %s97_s22 }
  0x8c   :  { %s3521_s24 = scalar_lea.hbm %s4050_s4, 8192 }
  0x8d   :  { %p3522_p8 = scmp.ne.s32.totalorder %s4050_s4, %s3521_s24  ;;  %p3525_p9 = scmp.lt.u32.totalorder %s3521_s24, %s4050_s4 }
  0x8f   :  { %p3527_p10 = pnand %p3525_p9, %p3522_p8 }
  0x91   :  { %3530 = shalt.err (!%p3527_p10)
}
  0x92   :  { %s3531_s2 = scalar_lea.vmem %s74_s5, 8192  ;;  %p3536_p12 = scmp.lt.s32.totalorder %s74_s5, %s74_s5 }
  0x93   :  { %p3532_p11 = scmp.ne.s32.totalorder %s74_s5, %s3531_s2  ;;  %p3537_p13 = scmp.lt.s32.totalorder %s3531_s2, %s3531_s2 }
  0x95   :  { %p3538_p0 = por %p3537_p13, %p3536_p12 }
  0x97   :  { %p3539_p1 = pnand %p3538_p0, %p3532_p11 }
  0x99   :  { %3542 = shalt.err (!%p3539_p1)
}
  0x9a   :  { %79 = dma.hbm_to_vmem [thread:$0]  %s4050_s4, 8192, %s74_s5, [#allocation9], %s3673_s28, %s3673_s28, %s3674_s27  }
  0x9b   :  { %s3543_s7 = scalar_lea.hbm %s4052_s6, 4096 }
  0x9c   :  { %p3544_p2 = scmp.ne.s32.totalorder %s4052_s6, %s3543_s7  ;;  %p3547_p3 = scmp.lt.u32.totalorder %s3543_s7, %s4052_s6 }
  0x9e   :  { %p3549_p4 = pnand %p3547_p3, %p3544_p2 }
  0xa0   :  { %3552 = shalt.err (!%p3549_p4)
}
  0xa1   :  { %s3553_s21 = scalar_lea.vmem %s3881_s22, 4096  ;;  %p3558_p6 = scmp.lt.s32.totalorder %s3881_s22, %s3881_s22 }
  0xa2   :  { %p3554_p5 = scmp.ne.s32.totalorder %s3881_s22, %s3553_s21  ;;  %p3559_p7 = scmp.lt.s32.totalorder %s3553_s21, %s3553_s21 }
  0xa4   :  { %p3560_p8 = por %p3559_p7, %p3558_p6 }
  0xa6   :  { %p3561_p9 = pnand %p3560_p8, %p3554_p5 }
  0xa8   :  { %3564 = shalt.err (!%p3561_p9)
}
  0xa9   :  { %103 = dma.hbm_to_vmem [thread:$0]  %s4052_s6, 4096, %s3881_s22, [#allocation12], %s3673_s28, %s3673_s28, %s3674_s27  }
  0xaa   :  { %s3685_s16 = smov [#allocation16]   ;;  %s3686_s25 = smov [#allocation19]  }
  0xab   :  { %s121_s11 = sshll.u32 %s3685_s16, 4  ;;  %s146_s24 = sshll.u32 %s3686_s25, 4  ;;  %s122_s11 = int_to_ptr.vmem [resolvable:$true] %s121_s11  ;;  %s147_s24 = int_to_ptr.vmem [resolvable:$true] %s146_s24 }
  0xac   :  { %s3565_s30 = scalar_lea.hbm %s4054_s8, 2048 }
  0xad   :  { %p3566_p10 = scmp.ne.s32.totalorder %s4054_s8, %s3565_s30  ;;  %p3569_p11 = scmp.lt.u32.totalorder %s3565_s30, %s4054_s8 }
  0xaf   :  { %p3571_p12 = pnand %p3569_p11, %p3566_p10 }
  0xb1   :  { %3574 = shalt.err (!%p3571_p12)
}
  0xb2   :  { %s3575_s6 = scalar_lea.vmem %s122_s11, 2048  ;;  %p3580_p0 = scmp.lt.s32.totalorder %s122_s11, %s122_s11 }
  0xb3   :  { %p3576_p13 = scmp.ne.s32.totalorder %s122_s11, %s3575_s6  ;;  %p3581_p1 = scmp.lt.s32.totalorder %s3575_s6, %s3575_s6 }
  0xb5   :  { %p3582_p2 = por %p3581_p1, %p3580_p0 }
  0xb7   :  { %p3583_p3 = pnand %p3582_p2, %p3576_p13 }
  0xb9   :  { %3586 = shalt.err (!%p3583_p3)
}
  0xba   :  { %127 = dma.hbm_to_vmem [thread:$0]  %s4054_s8, 2048, %s122_s11, [#allocation15], %s3677_s18, %s3677_s18, %s3678_s17  }
  0xbb   :  { %s3587_s26 = scalar_lea.hbm %s4056_s10, 16 }
  0xbc   :  { %p3588_p4 = scmp.ne.s32.totalorder %s4056_s10, %s3587_s26  ;;  %p3591_p5 = scmp.lt.u32.totalorder %s3587_s26, %s4056_s10 }
  0xbe   :  { %p3593_p6 = pnand %p3591_p5, %p3588_p4 }
  0xc0   :  { %3596 = shalt.err (!%p3593_p6)
}
  0xc1   :  { %s3597_s20 = scalar_lea.vmem %s147_s24, 16  ;;  %s3601_s21 = scalar_lea.vmem %s147_s24, 32 }
  0xc2   :  { %p3598_p7 = scmp.ne.s32.totalorder %s147_s24, %s3597_s20  ;;  %p3602_p8 = scmp.lt.s32.totalorder %s147_s24, %s147_s24 }
  0xc3   :  { %p3603_p9 = scmp.lt.s32.totalorder %s3601_s21, %s3597_s20 }
  0xc5   :  { %p3604_p10 = por %p3603_p9, %p3602_p8 }
  0xc7   :  { %p3605_p11 = pnand %p3604_p10, %p3598_p7 }
  0xc9   :  { %3608 = shalt.err (!%p3605_p11)
}
  0xca   :  { %149 = dma.hbm_to_vmem [thread:$0]  %s4056_s10, 16, %s147_s24, [#allocation18]  }
  0xcb   :  { %s3687_s4 = smov [#allocation22]   ;;  %s3609_s25 = scalar_lea.hbm %s4058_s12, 32 }
  0xcc   :  { %s166_s5 = sshll.u32 %s3687_s4, 4  ;;  %p3610_p12 = scmp.ne.s32.totalorder %s4058_s12, %s3609_s25  ;;  %s167_s5 = int_to_ptr.vmem [resolvable:$true] %s166_s5 }
  0xcd   :  { %p3613_p13 = scmp.lt.u32.totalorder %s3609_s25, %s4058_s12 }
  0xcf   :  { %p3615_p0 = pnand %p3613_p13, %p3610_p12 }
  0xd1   :  { %3618 = shalt.err (!%p3615_p0)
}
  0xd2   :  { %s3619_s2 = scalar_lea.vmem %s167_s5, 32  ;;  %p3624_p2 = scmp.lt.s32.totalorder %s167_s5, %s167_s5 }
  0xd3   :  { %p3620_p1 = scmp.ne.s32.totalorder %s167_s5, %s3619_s2  ;;  %p3625_p3 = scmp.lt.s32.totalorder %s3619_s2, %s3619_s2 }
  0xd5   :  { %p3626_p4 = por %p3625_p3, %p3624_p2 }
  0xd7   :  { %p3627_p5 = pnand %p3626_p4, %p3620_p1 }
  0xd9   :  { %3630 = shalt.err (!%p3627_p5)
}
  0xda   :  { %169 = dma.hbm_to_vmem [thread:$0]  %s4058_s12, 32, %s167_s5, [#allocation21]  }
  0xdb   :  { %3653 = dma.done.wait [#allocation3], 32  }
  0xdc   :  { %3654 = vsyncadd [#allocation3], 4294967264 }
  0xdd   :  { %3655 = dma.done.wait [#allocation6], 1568  }
  0xde   :  { %3656 = vsyncadd [#allocation6], 4294965728 }
  0xdf   :  { %3657 = dma.done.wait [#allocation9], 8704  }
  0xe0   :  { %3658 = vsyncadd [#allocation9], 4294958592 }
  0xe1   :  { %3659 = dma.done.wait [#allocation12], 12288  }
  0xe2   :  { %3660 = vsyncadd [#allocation12], 4294955008 }
  0xe3   :  { %3661 = dma.done.wait [#allocation15], 6144  }
  0xe4   :  { %3662 = vsyncadd [#allocation15], 4294961152 }
  0xe5   :  { %3663 = dma.done.wait [#allocation18], 2064  }
  0xe6   :  { %3664 = vsyncadd [#allocation18], 4294965232 }
  0xe7   :  { %3665 = dma.done.wait [#allocation21], 544  }
  0xe8   :  { %3666 = vsyncadd [#allocation21], 4294966752  ;;  %v3688_v0 = vmov 0   ;;  %v226_v1 = vld [vmem:[#allocation8] sm:$0xff]  ;;  %vm254_vm0 = vcmask 1043456   ;;  %v228_v3 = vld [vmem:[#allocation8 + $0x10] sm:$0xff] }
  0xe9   :  { %311 = vmatprep.mubr.bf16.mxu0 %v3688_v0  ;;  %352 = vmatprep.mubr.bf16.mxu1 %v3688_v0  ;;  %v212_v2 = vld [vmem:[#allocation5] sm:$0x3]  ;;  %v2656_v4 = vcombine.high %v226_v1, %v226_v1  ;;  %v2655_v5 = vcombine.low %v226_v1, %v226_v1  ;;  %v2660_v6 = vcombine.high %v228_v3, %v228_v3  ;;  %v214_v8 = vld [vmem:[#allocation7] sm:$0xff]  ;;  %v227_v12 = vld [vmem:[#allocation8 + $0x8] sm:$0xff]  ;;  %vm250_vm1 = vcmask 64512   ;;  %s3691_s12 = smov [#allocation23]  }
  0xea   :  { %3008 = vset.pattern.permute.xlu0 %v3688_v0  ;;  %v2659_v7 = vcombine.low %v228_v3, %v228_v3  ;;  %v218_v9 = vld [vmem:[#allocation7 + $0x20] sm:$0xff]  ;;  %v213_v11 = vpack.c.bf16 %v212_v2, %v212_v2  ;;  %v229_v13 = vld [vmem:[#allocation8 + $0x18] sm:$0xff]  ;;  %v2658_v16 = vcombine.high %v227_v12, %v227_v12  ;;  %v2657_v17 = vcombine.low %v227_v12, %v227_v12  ;;  %v215_v20 = vld [vmem:[#allocation7 + $0x8] sm:$0xff]  ;;  %s2640_s15 = sshll.u32 %s3691_s12, 4  ;;  %s2641_s15 = int_to_ptr.vmem [resolvable:$true] %s2640_s15 }
  0xeb   :  { %2663 = vmatprep.subr.msk.bf16.mxu0 %vm254_vm0, %v2656_v4  ;;  %v256_v10 = vsel %vm254_vm0, %v2655_v5, 0  ;;  %v2672_v15 = vcombine.high %v214_v8, %v218_v9  ;;  %v2662_v18 = vcombine.high %v229_v13, %v229_v13  ;;  %v2661_v19 = vcombine.low %v229_v13, %v229_v13  ;;  %v219_v22 = vld [vmem:[#allocation7 + $0x28] sm:$0xff]  ;;  %v222_v23 = vld [vmem:[#allocation7 + $0x40] sm:$0xff]  ;;  %v216_v29 = vld [vmem:[#allocation7 + $0x10] sm:$0xff]  ;;  %p3636_p7 = scmp.lt.s32.totalorder %s2641_s15, %s2641_s15 }
  0xec   :  { %280 = vmatpush1.bf16.msra.mxu0 %v256_v10  ;;  %v268_v14 = vsel %vm254_vm0, %v2659_v7, 0  ;;  %2665 = vmatprep.subr.msk.bf16.mxu1 %vm254_vm0, %v2658_v16  ;;  %v262_v21 = vsel %vm254_vm0, %v2657_v17, 0  ;;  %v2674_v25 = vcombine.high %v215_v20, %v219_v22  ;;  %v2671_v26 = vcombine.low %v214_v8, %v218_v9  ;;  %v220_v30 = vld [vmem:[#allocation7 + $0x30] sm:$0xff]  ;;  %v223_v31 = vld [vmem:[#allocation7 + $0x48] sm:$0xff]  ;;  %v210_v32 = vld [vmem:[#allocation2] sm:$0x3] }
  0xed   :  { %2667 = vmatprep.subr.msk.bf16.mxu0 %vm254_vm0, %v2660_v6  ;;  %321 = vmatpush1.bf16.msra.mxu1 %v262_v21  ;;  %v274_v24 = vsel %vm254_vm0, %v2661_v19, 0  ;;  %v2680_v27 = vcombine.high %v222_v23, %v222_v23  ;;  %v2679_v28 = vcombine.low %v222_v23, %v222_v23  ;;  %v2676_v34 = vcombine.high %v216_v29, %v220_v30  ;;  %v224_v35 = vld [vmem:[#allocation7 + $0x50] sm:$0xff]  ;;  %v217_v39 = vld [vmem:[#allocation7 + $0x18] sm:$0xff]  ;;  %v3027_v52 = vld [vmem:[#allocation10 + $0x4] ss:$8 sps:$4 sm:$0xff]  }
  0xee   :  { %2669 = vmatprep.subr.msk.bf16.mxu1 %vm254_vm0, %v2662_v18  ;;  %v2673_v36 = vcombine.low %v215_v20, %v219_v22  ;;  %v2682_v37 = vcombine.high %v223_v31, %v223_v31  ;;  %v2681_v38 = vcombine.low %v223_v31, %v223_v31  ;;  %v211_v40 = vpack.c.bf16 %v210_v32, %v210_v32  ;;  %v221_v41 = vld [vmem:[#allocation7 + $0x38] sm:$0xff]  ;;  %v3025_v53 = vld [vmem:[#allocation10] ss:$8 sps:$4 sm:$0xff]   ;;  %v3036_v55 = vld [vmem:[#allocation11 + $0x4] ss:$8 sps:$4 sm:$0xff]  }
  0xef   :  { %2664 = vmatmul.mubr.msk.bf16.vlgmr.msra.gmra.mrb[0].mxu0 %vm250_vm1, %v213_v11  ;;  %v508_v33 = vsel %vm254_vm0, %v2679_v28, 0  ;;  %vm503_vm2 = vcmask 195584   ;;  %v2675_v42 = vcombine.low %v216_v29, %v220_v30  ;;  %v2684_v43 = vcombine.high %v224_v35, %v224_v35  ;;  %v225_v47 = vld [vmem:[#allocation7 + $0x58] sm:$0xff]  ;;  %v3033_v58 = vld [vmem:[#allocation10 + $0x24] ss:$8 sps:$4 sm:$0xff]  }
  0xf0   :  { %362 = vmatpush1.bf16.msra.mxu0 %v268_v14  ;;  %393 = vmatprep.mubr.bf16.mxu0 %v3688_v0  ;;  %v2683_v44 = vcombine.low %v224_v35, %v224_v35  ;;  %v514_v45 = vsel %vm254_vm0, %v2681_v38, 0  ;;  %v2678_v46 = vcombine.high %v217_v39, %v221_v41  ;;  %v2677_v49 = vcombine.low %v217_v39, %v221_v41  ;;  %v3030_v54 = vld [vmem:[#allocation10 + $0x14] ss:$8 sps:$4 sm:$0xff]   ;;  %v3028_v57 = vld [vmem:[#allocation10 + $0x10] ss:$8 sps:$4 sm:$0xff]  }
  0xf1   :  { %531 = vmatprep.subr.bf16.mxu0 %v2672_v15  ;;  %2666 = vmatmul.mubr.msk.bf16.vlgmr.msra.gmra.mrb[0].mxu1 %vm250_vm1, %v213_v11  ;;  %v2686_v50 = vcombine.high %v225_v47, %v225_v47  ;;  %v2685_v51 = vcombine.low %v225_v47, %v225_v47  ;;  %v3034_v59 = vld [vmem:[#allocation11] ss:$8 sps:$4 sm:$0xff]   ;;  %v3042_v60 = vld [vmem:[#allocation11 + $0x14] ss:$8 sps:$4 sm:$0xff]   ;;  %v3040_v63 = vld [vmem:[#allocation11 + $0x10] ss:$8 sps:$4 sm:$0xff]  }
  0xf2   :  { %403 = vmatpush1.bf16.msra.mxu1 %v274_v24  ;;  %434 = vmatprep.mubr.bf16.mxu1 %v3688_v0  ;;  %v520_v48 = vsel %vm254_vm0, %v2683_v44, 0  ;;  %v3031_v61 = vld [vmem:[#allocation10 + $0x20] ss:$8 sps:$4 sm:$0xff]   ;;  %v3039_v62 = vld [vmem:[#allocation10 + $0x34] ss:$8 sps:$4 sm:$0xff]   ;;  %vm3690_vm3 = vmmov 0  }
  0xf3   :  { %572 = vmatprep.subr.bf16.mxu1 %v2674_v25  ;;  %v526_v56 = vsel %vm254_vm0, %v2685_v51, 0  ;;  %v3037_v1 = vld [vmem:[#allocation10 + $0x30] ss:$8 sps:$4 sm:$0xff]   ;;  %v3045_v2 = vld [vmem:[#allocation10 + $0x44] ss:$8 sps:$4 sm:$0xff]   ;;  %vm2580_vm4 = vcmask 523264  }
  0xf4   :  { %v3046_v3 = vld [vmem:[#allocation11 + $0x20] ss:$8 sps:$4 sm:$0xff]   ;;  %v3054_v4 = vld [vmem:[#allocation11 + $0x34] ss:$8 sps:$4 sm:$0xff]   ;;  %v3052_v7 = vld [vmem:[#allocation11 + $0x30] ss:$8 sps:$4 sm:$0xff]  }
  0xf5   :  { %v3043_v5 = vld [vmem:[#allocation10 + $0x40] ss:$8 sps:$4 sm:$0xff]   ;;  %v3051_v6 = vld [vmem:[#allocation10 + $0x54] ss:$8 sps:$4 sm:$0xff]   ;;  %v3060_v8 = vld [vmem:[#allocation11 + $0x44] ss:$8 sps:$4 sm:$0xff]  }
  0xf6   :  { %v3049_v9 = vld [vmem:[#allocation10 + $0x50] ss:$8 sps:$4 sm:$0xff]   ;;  %v3057_v10 = vld [vmem:[#allocation10 + $0x64] ss:$8 sps:$4 sm:$0xff]   ;;  %v3066_v12 = vld [vmem:[#allocation11 + $0x54] ss:$8 sps:$4 sm:$0xff]  }
  0xf7   :  { %2668 = vmatmul.mubr.msk.bf16.vlgmr.msra.gmra.mrb[4].mxu0 %vm250_vm1, %v213_v11  ;;  %v3055_v13 = vld [vmem:[#allocation10 + $0x60] ss:$8 sps:$4 sm:$0xff]   ;;  %v3063_v14 = vld [vmem:[#allocation10 + $0x74] ss:$8 sps:$4 sm:$0xff]   ;;  %v3064_v15 = vld [vmem:[#allocation11 + $0x50] ss:$8 sps:$4 sm:$0xff]  }
  0xf8   :  { %532 = vmatpush1.bf16.msra.mxu0 %v2671_v26  ;;  %563 = vmatprep.mubr.bf16.mxu0 %v3688_v0  ;;  %v3072_v16 = vld [vmem:[#allocation11 + $0x64] ss:$8 sps:$4 sm:$0xff]   ;;  %v3061_v17 = vld [vmem:[#allocation10 + $0x70] ss:$8 sps:$4 sm:$0xff]   ;;  %v3070_v19 = vld [vmem:[#allocation11 + $0x60] ss:$8 sps:$4 sm:$0xff]  }
  0xf9   :  { %2687 = vmatprep.subr.msk.bf16.mxu0 %vm254_vm0, %v2680_v27  ;;  %2670 = vmatmul.mubr.msk.bf16.vlgmr.msra.gmra.mrb[4].mxu1 %vm250_vm1, %v213_v11  ;;  %v3058_v11 = vld [vmem:[#allocation11 + $0x40] ss:$8 sps:$4 sm:$0xff]   ;;  %v3069_v18 = vld [vmem:[#allocation10 + $0x84] ss:$8 sps:$4 sm:$0xff]   ;;  %v3078_v20 = vld [vmem:[#allocation11 + $0x74] ss:$8 sps:$4 sm:$0xff]  }
  0xfa   :  { %573 = vmatpush1.bf16.msra.mxu1 %v2673_v36  ;;  %604 = vmatprep.mubr.bf16.mxu1 %v3688_v0  ;;  %v3067_v21 = vld [vmem:[#allocation10 + $0x80] ss:$8 sps:$4 sm:$0xff]   ;;  %v3075_v22 = vld [vmem:[#allocation10 + $0x94] ss:$8 sps:$4 sm:$0xff]   ;;  %v3076_v23 = vld [vmem:[#allocation11 + $0x70] ss:$8 sps:$4 sm:$0xff]  }
  0xfb   :  { %2689 = vmatprep.subr.msk.bf16.mxu1 %vm254_vm0, %v2682_v37  ;;  %v3073_v24 = vld [vmem:[#allocation10 + $0x90] ss:$8 sps:$4 sm:$0xff]   ;;  %v3081_v25 = vld [vmem:[#allocation10 + $0xa4] ss:$8 sps:$4 sm:$0xff]   ;;  %v3079_v27 = vld [vmem:[#allocation10 + $0xa0] ss:$8 sps:$4 sm:$0xff]  }
  0xfc   :  { %534 = vmatpush1.bf16.msra.mxu0 %v508_v33  ;;  %v3084_v26 = vld [vmem:[#allocation11 + $0x84] ss:$8 sps:$4 sm:$0xff]   ;;  %v3082_v28 = vld [vmem:[#allocation11 + $0x80] ss:$8 sps:$4 sm:$0xff]   ;;  %v3085_v29 = vld [vmem:[#allocation10 + $0xb0] ss:$8 sps:$4 sm:$0xff]  }
  0xfd   :  { %613 = vmatprep.subr.bf16.mxu0 %v2676_v34  ;;  %v3087_v30 = vld [vmem:[#allocation10 + $0xb4] ss:$8 sps:$4 sm:$0xff]   ;;  %v3088_v31 = vld [vmem:[#allocation11 + $0x90] ss:$8 sps:$4 sm:$0xff]   ;;  %v3093_v33 = vld [vmem:[#allocation10 + $0xc4] ss:$8 sps:$4 sm:$0xff]  }
  0xfe   :  { %575 = vmatpush1.bf16.msra.mxu1 %v514_v45  ;;  %v3090_v32 = vld [vmem:[#allocation11 + $0x94] ss:$8 sps:$4 sm:$0xff]   ;;  %v3096_v34 = vld [vmem:[#allocation11 + $0xa4] ss:$8 sps:$4 sm:$0xff]   ;;  %v3091_v35 = vld [vmem:[#allocation10 + $0xc0] ss:$8 sps:$4 sm:$0xff]  }
  0xff   :  { %2688 = vmatmul.mubr.msk.bf16.vlgmr.msra.gmra.mrb[8].mxu0 %vm503_vm2, %v211_v40  ;;  %654 = vmatprep.subr.bf16.mxu1 %v2678_v46  ;;  %v3094_v36 = vld [vmem:[#allocation11 + $0xa0] ss:$8 sps:$4 sm:$0xff]   ;;  %v3097_v37 = vld [vmem:[#allocation10 + $0xd0] ss:$8 sps:$4 sm:$0xff]   ;;  %v3099_v38 = vld [vmem:[#allocation10 + $0xd4] ss:$8 sps:$4 sm:$0xff]  }
 0x100   :  { %614 = vmatpush1.bf16.msra.mxu0 %v2675_v42  ;;  %645 = vmatprep.mubr.bf16.mxu0 %v3688_v0  ;;  %v3100_v39 = vld [vmem:[#allocation11 + $0xb0] ss:$8 sps:$4 sm:$0xff]   ;;  %v3105_v41 = vld [vmem:[#allocation10 + $0xe4] ss:$8 sps:$4 sm:$0xff]   ;;  %v3103_v42 = vld [vmem:[#allocation10 + $0xe0] ss:$8 sps:$4 sm:$0xff]  }
 0x101   :  { %2691 = vmatprep.subr.msk.bf16.mxu0 %vm254_vm0, %v2684_v43  ;;  %2690 = vmatmul.mubr.msk.bf16.vlgmr.msra.gmra.mrb[8].mxu1 %vm503_vm2, %v211_v40  ;;  %v3106_v43 = vld [vmem:[#allocation11 + $0xc0] ss:$8 sps:$4 sm:$0xff]   ;;  %v3108_v44 = vld [vmem:[#allocation11 + $0xc4] ss:$8 sps:$4 sm:$0xff]   ;;  %v3111_v45 = vld [vmem:[#allocation10 + $0xf4] ss:$8 sps:$4 sm:$0xff]  }
 0x102   :  { %655 = vmatpush1.bf16.msra.mxu1 %v2677_v49  ;;  %686 = vmatprep.mubr.bf16.mxu1 %v3688_v0  ;;  %v3048_v0 = vld [vmem:[#allocation11 + $0x24] ss:$8 sps:$4 sm:$0xff]   ;;  %v3114_v46 = vld [vmem:[#allocation11 + $0xd4] ss:$8 sps:$4 sm:$0xff]   ;;  %v3109_v47 = vld [vmem:[#allocation10 + $0xf0] ss:$8 sps:$4 sm:$0xff]  }
 0x103   :  { %2693 = vmatprep.subr.msk.bf16.mxu1 %vm254_vm0, %v2686_v50  ;;  %v3117_v49 = vld [vmem:[#allocation10 + $0x104] ss:$8 sps:$4 sm:$0xff]   ;;  %v3118_v51 = vld [vmem:[#allocation11 + $0xe0] ss:$8 sps:$4 sm:$0xff]   ;;  %vm2632_vm5 = vcmask 9216  }
 0x104   :  { %616 = vmatpush1.bf16.msra.mxu0 %v520_v48  ;;  %v3112_v48 = vld [vmem:[#allocation11 + $0xd0] ss:$8 sps:$4 sm:$0xff]   ;;  %v3120_v50 = vld [vmem:[#allocation11 + $0xe4] ss:$8 sps:$4 sm:$0xff]  }
 0x105   :  { %1222 = vmatprep.subr.bf16.mxu0 %v3027_v52  ;;  %v3126_v52 = vld [vmem:[#allocation11 + $0xf4] ss:$8 sps:$4 sm:$0xff]  }
 0x106   :  { %657 = vmatpush1.bf16.msra.mxu1 %v526_v56 }
 0x107   :  { %2692 = vmatmul.mubr.msk.bf16.vlgmr.msra.gmra.mrb[12].mxu0 %vm503_vm2, %v211_v40  ;;  %1637 = vmatprep.subr.bf16.mxu1 %v3036_v55  ;;  %v697_v55 = vlaneseq }
 0x108   :  { %1223 = vmatpush1.bf16.msra.mxu0 %v3025_v53  ;;  %v3124_v53 = vld [vmem:[#allocation11 + $0xf0] ss:$8 sps:$4 sm:$0xff]  }
 0x109   :  { %1224 = vmatprep.subr.bf16.mxu0 %v3030_v54  ;;  %2694 = vmatmul.mubr.msk.bf16.vlgmr.msra.gmra.mrb[12].mxu1 %vm503_vm2, %v211_v40  ;;  %v3102_v40 = vld [vmem:[#allocation11 + $0xb4] ss:$8 sps:$4 sm:$0xff]   ;;  %v3132_v54 = vld [vmem:[#allocation11 + $0x104] ss:$8 sps:$4 sm:$0xff]   ;;  %v3990_v56 = vshrl.u32 %v697_v55, 7 }
 0x10a   :  { %1638 = vmatpush1.bf16.msra.mxu1 %v3034_v59 }
 0x10b   :  { %1639 = vmatprep.subr.bf16.mxu1 %v3042_v60  ;;  %v723_v60 = vsub.s32 6, %v3990_v56 }
 0x10c   :  { %1225 = vmatpush1.bf16.msra.mxu0 %v3028_v57  ;;  %v707_v57 = vsub.s32 2, %v3990_v56 }
 0x10d   :  { %1226 = vmatprep.subr.bf16.mxu0 %v3033_v58  ;;  %v3993_v58 = vld [vmem:[#allocation20] ss:$4 sm:$0xff] }
 0x10e   :  { %1640 = vmatpush1.bf16.msra.mxu1 %v3040_v63  ;;  %v708_v59 = vrot.slane %v3993_v58, %v707_v57  ;;  %v3121_v57 = vld [vmem:[#allocation10 + $0x110] ss:$8 sps:$4 sm:$0xff]  }
 0x10f   :  { %1641 = vmatprep.subr.bf16.mxu1 %v3048_v0 }
 0x110   :  { %1227 = vmatpush1.bf16.msra.mxu0 %v3031_v61  ;;  %v3998_v61 = vrot.slane %v3993_v58, %v723_v60  ;;  %v3129_v60 = vld [vmem:[#allocation10 + $0x124] ss:$8 sps:$4 sm:$0xff]  }
 0x111   :  { %1228 = vmatprep.subr.bf16.mxu0 %v3039_v62 }
 0x112   :  { %1642 = vmatpush1.bf16.msra.mxu1 %v3046_v3 }
 0x113   :  { %1643 = vmatprep.subr.bf16.mxu1 %v3054_v4 }
 0x114   :  { %1229 = vmatpush1.bf16.msra.mxu0 %v3037_v1 }
 0x115   :  { %1230 = vmatprep.subr.bf16.mxu0 %v3045_v2 }
 0x116   :  { %1644 = vmatpush1.bf16.msra.mxu1 %v3052_v7 }
 0x117   :  { %1645 = vmatprep.subr.bf16.mxu1 %v3060_v8 }
 0x118   :  { %1231 = vmatpush1.bf16.msra.mxu0 %v3043_v5 }
 0x119   :  { %1232 = vmatprep.subr.bf16.mxu0 %v3051_v6 }
 0x11a   :  { %1646 = vmatpush1.bf16.msra.mxu1 %v3058_v11  ;;  %v4004_v11 = vsub.s32 1, %v3990_v56 }
 0x11b   :  { %1647 = vmatprep.subr.bf16.mxu1 %v3066_v12 }
 0x11c   :  { %1233 = vmatpush1.bf16.msra.mxu0 %v3049_v9 }
 0x11d   :  { %1234 = vmatprep.subr.bf16.mxu0 %v3057_v10  ;;  %v4001_v10 = vsub.s32 0, %v3990_v56 }
 0x11e   :  { %1648 = vmatpush1.bf16.msra.mxu1 %v3064_v15 }
 0x11f   :  { %1649 = vmatprep.subr.bf16.mxu1 %v3072_v16 }
 0x120   :  { %1235 = vmatpush1.bf16.msra.mxu0 %v3055_v13 }
 0x121   :  { %1236 = vmatprep.subr.bf16.mxu0 %v3063_v14  ;;  %v700_v14 = vrot.slane %v3993_v58, %v4001_v10 }
 0x122   :  { %1650 = vmatpush1.bf16.msra.mxu1 %v3070_v19 }
 0x123   :  { %1651 = vmatprep.subr.bf16.mxu1 %v3078_v20 }
 0x124   :  { %1237 = vmatpush1.bf16.msra.mxu0 %v3061_v17  ;;  %v704_v17 = vrot.slane %v3993_v58, %v4004_v11 }
 0x125   :  { %1238 = vmatprep.subr.bf16.mxu0 %v3069_v18 }
 0x126   :  { %1652 = vmatpush1.bf16.msra.mxu1 %v3076_v23 }
 0x127   :  { %1653 = vmatprep.subr.bf16.mxu1 %v3084_v26  ;;  %v715_v26 = vsub.s32 4, %v3990_v56 }
 0x128   :  { %1239 = vmatpush1.bf16.msra.mxu0 %v3067_v21  ;;  %v711_v21 = vsub.s32 3, %v3990_v56 }
 0x129   :  { %1240 = vmatprep.subr.bf16.mxu0 %v3075_v22 }
 0x12a   :  { %1654 = vmatpush1.bf16.msra.mxu1 %v3082_v28  ;;  %v719_v28 = vsub.s32 5, %v3990_v56 }
 0x12b   :  { %1655 = vmatprep.subr.bf16.mxu1 %v3090_v32 }
 0x12c   :  { %1241 = vmatpush1.bf16.msra.mxu0 %v3073_v24 }
 0x12d   :  { %1242 = vmatprep.subr.bf16.mxu0 %v3081_v25 }
 0x12e   :  { %1656 = vmatpush1.bf16.msra.mxu1 %v3088_v31  ;;  %v712_v31 = vrot.slane %v3993_v58, %v711_v21  ;;  %v3142_v21 = vld [vmem:[#allocation11 + $0x120] ss:$8 sps:$4 sm:$0xff]  }
 0x12f   :  { %1657 = vmatprep.subr.bf16.mxu1 %v3096_v34 }
 0x130   :  { %1243 = vmatpush1.bf16.msra.mxu0 %v3079_v27 }
 0x131   :  { %1244 = vmatprep.subr.bf16.mxu0 %v3087_v30 }
 0x132   :  { %1658 = vmatpush1.bf16.msra.mxu1 %v3094_v36 }
 0x133   :  { %1659 = vmatprep.subr.bf16.mxu1 %v3102_v40  ;;  %v720_v40 = vrot.slane %v3993_v58, %v719_v28  ;;  %v3151_v28 = vld [vmem:[#allocation10 + $0x160] ss:$8 sps:$4 sm:$0xff]  }
 0x134   :  { %1245 = vmatpush1.bf16.msra.mxu0 %v3085_v29 }
 0x135   :  { %1246 = vmatprep.subr.bf16.mxu0 %v3093_v33 }
 0x136   :  { %1660 = vmatpush1.bf16.msra.mxu1 %v3100_v39 }
 0x137   :  { %1661 = vmatprep.subr.bf16.mxu1 %v3108_v44 }
 0x138   :  { %1247 = vmatpush1.bf16.msra.mxu0 %v3091_v35  ;;  %v716_v35 = vrot.slane %v3993_v58, %v715_v26  ;;  %v3153_v26 = vld [vmem:[#allocation10 + $0x164] ss:$8 sps:$4 sm:$0xff]  }
 0x139   :  { %1248 = vmatprep.subr.bf16.mxu0 %v3099_v38 }
 0x13a   :  { %1662 = vmatpush1.bf16.msra.mxu1 %v3106_v43 }
 0x13b   :  { %1663 = vmatprep.subr.bf16.mxu1 %v3114_v46 }
 0x13c   :  { %1249 = vmatpush1.bf16.msra.mxu0 %v3097_v37 }
 0x13d   :  { %1250 = vmatprep.subr.bf16.mxu0 %v3105_v41  ;;  %v3115_v41 = vld [vmem:[#allocation10 + $0x100] ss:$8 sps:$4 sm:$0xff]  }
 0x13e   :  { %1664 = vmatpush1.bf16.msra.mxu1 %v3112_v48 }
 0x13f   :  { %1665 = vmatprep.subr.bf16.mxu1 %v3120_v50 }
 0x140   :  { %1251 = vmatpush1.bf16.msra.mxu0 %v3103_v42 }
 0x141   :  { %1252 = vmatprep.subr.bf16.mxu0 %v3111_v45 }
 0x142   :  { %1666 = vmatpush1.bf16.msra.mxu1 %v3118_v51 }
 0x143   :  { %1667 = vmatprep.subr.bf16.mxu1 %v3126_v52 }
 0x144   :  { %1253 = vmatpush1.bf16.msra.mxu0 %v3109_v47  ;;  %v3123_v47 = vld [vmem:[#allocation10 + $0x114] ss:$8 sps:$4 sm:$0xff]  }
 0x145   :  { %1263 = vmatprep.subr.bf16.mxu0 %v3117_v49  ;;  %v727_v49 = vsub.s32 7, %v3990_v56 }
 0x146   :  { %1668 = vmatpush1.bf16.msra.mxu1 %v3124_v53 }
 0x147   :  { %1678 = vmatprep.subr.bf16.mxu1 %v3132_v54 }
 0x1c2   :  { %v313_v62 = vpop.f32.mrb[0].mxu0 }
 0x1c3   :  { %v315_v63 = vpop.f32.mrb[1].mxu0 }
 0x1c4   :  { %v317_v0 = vpop.f32.mrb[2].mxu0  ;;  %v354_v2 = vpop.f32.mrb[0].mxu1 }
 0x1c5   :  { %v318_v1 = vpop.f32.mrb[3].mxu0  ;;  %v356_v3 = vpop.f32.mrb[1].mxu1  ;;  %v728_v0 = vrot.slane %v3993_v58, %v727_v49  ;;  %v3181_v49 = vld [vmem:[#allocation10 + $0x1b0] ss:$8 sps:$4 sm:$0xff]  }
 0x1c6   :  { %v358_v4 = vpop.f32.mrb[2].mxu1 }
 0x1c7   :  { %v359_v6 = vpop.f32.mrb[3].mxu1 }
 0x1c8   :  { %v3127_v6 = vld [vmem:[#allocation10 + $0x120] ss:$8 sps:$4 sm:$0xff]  }
 0x1ca   :  { %v395_v5 = vpop.f32.mrb[4].mxu0 }
 0x1cb   :  { %v397_v7 = vpop.f32.mrb[5].mxu0 }
 0x1cc   :  { %v399_v8 = vpop.f32.mrb[6].mxu0  ;;  %v436_v12 = vpop.f32.mrb[4].mxu1 }
 0x1cd   :  { %v400_v9 = vpop.f32.mrb[7].mxu0  ;;  %v438_v13 = vpop.f32.mrb[5].mxu1 }
 0x1ce   :  { %v440_v15 = vpop.f32.mrb[6].mxu1 }
 0x1cf   :  { %v441_v18 = vpop.f32.mrb[7].mxu1  ;;  %v3135_v15 = vld [vmem:[#allocation10 + $0x134] ss:$8 sps:$4 sm:$0xff]  }
 0x1d0   :  { %v3141_v18 = vld [vmem:[#allocation10 + $0x144] ss:$8 sps:$4 sm:$0xff]  }
 0x1d2   :  { %v565_v16 = vpop.f32.mrb[8].mxu0 }
 0x1d3   :  { %v566_v19 = vadd.f32 %v565_v16, %v313_v62  ;;  %v567_v20 = vpop.f32.mrb[9].mxu0  ;;  %v3138_v16 = vld [vmem:[#allocation11 + $0x114] ss:$8 sps:$4 sm:$0xff]  }
 0x1d4   :  { %v568_v22 = vadd.f32 %v567_v20, %v315_v63  ;;  %v569_v23 = vpop.f32.mrb[10].mxu0  ;;  %v606_v30 = vpop.f32.mrb[8].mxu1 }
 0x1d5   :  { %v737_v24 = vadd.f32 %v700_v14, %v566_v19  ;;  %v570_v25 = vpop.f32.mrb[11].mxu0  ;;  %v607_v33 = vadd.f32 %v606_v30, %v354_v2  ;;  %v608_v34 = vpop.f32.mrb[9].mxu1  ;;  %v3144_v19 = vld [vmem:[#allocation11 + $0x124] ss:$8 sps:$4 sm:$0xff]   ;;  %v3150_v23 = vld [vmem:[#allocation11 + $0x134] ss:$8 sps:$4 sm:$0xff]  }
 0x1d6   :  { %v738_v27 = vadd.f32 %v704_v17, %v568_v22  ;;  %v609_v36 = vadd.f32 %v608_v34, %v356_v3  ;;  %v610_v37 = vpop.f32.mrb[10].mxu1  ;;  %v3147_v22 = vld [vmem:[#allocation10 + $0x154] ss:$8 sps:$4 sm:$0xff]   ;;  %v3148_v25 = vld [vmem:[#allocation11 + $0x130] ss:$8 sps:$4 sm:$0xff]  }
 0x1d7   :  { %v745_v29 = vmax.f32 %v737_v24, 0.0  ;;  %v4016_v42 = vadd.f32 %v708_v59, %v607_v33  ;;  %v611_v43 = vpop.f32.mrb[11].mxu1  ;;  %v3145_v24 = vld [vmem:[#allocation10 + $0x150] ss:$8 sps:$4 sm:$0xff]   ;;  %v3159_v30 = vld [vmem:[#allocation10 + $0x174] ss:$8 sps:$4 sm:$0xff]  }
 0x1d8   :  { %v746_v32 = vmax.f32 %v738_v27, 0.0  ;;  %v740_v48 = vadd.f32 %v712_v31, %v609_v36  ;;  %v3156_v27 = vld [vmem:[#allocation11 + $0x144] ss:$8 sps:$4 sm:$0xff]   ;;  %v3162_v31 = vld [vmem:[#allocation11 + $0x154] ss:$8 sps:$4 sm:$0xff]  }
 0x1d9   :  { %v753_v44 = vpack.c.bf16 %v745_v29, %v745_v29  ;;  %v3154_v29 = vld [vmem:[#allocation11 + $0x140] ss:$8 sps:$4 sm:$0xff]   ;;  %v3160_v33 = vld [vmem:[#allocation11 + $0x150] ss:$8 sps:$4 sm:$0xff]   ;;  %v3165_v34 = vld [vmem:[#allocation10 + $0x184] ss:$8 sps:$4 sm:$0xff]  }
 0x1da   :  { %v754_v38 = vpack.c.bf16 %v746_v32, %v746_v32  ;;  %v647_v39 = vpop.f32.mrb[12].mxu0  ;;  %v748_v54 = vmax.f32 %v740_v48, 0.0  ;;  %v3157_v32 = vld [vmem:[#allocation10 + $0x170] ss:$8 sps:$4 sm:$0xff]   ;;  %v3163_v36 = vld [vmem:[#allocation10 + $0x180] ss:$8 sps:$4 sm:$0xff]  }
 0x1db   :  { %v648_v45 = vadd.f32 %v647_v39, %v395_v5  ;;  %v649_v46 = vpop.f32.mrb[13].mxu0  ;;  %v3166_v37 = vld [vmem:[#allocation11 + $0x160] ss:$8 sps:$4 sm:$0xff]   ;;  %v3174_v39 = vld [vmem:[#allocation11 + $0x174] ss:$8 sps:$4 sm:$0xff]  }
 0x1dc   :  { %v650_v50 = vadd.f32 %v649_v46, %v397_v7  ;;  %v651_v51 = vpop.f32.mrb[14].mxu0  ;;  %1254 = vmatprep.mubr.bf16.mxu0 %v754_v38  ;;  %v756_v62 = vpack.c.bf16 %v748_v54, %v748_v54  ;;  %v688_v63 = vpop.f32.mrb[12].mxu1  ;;  %v3130_v7 = vld [vmem:[#allocation11 + $0x100] ss:$8 sps:$4 sm:$0xff]   ;;  %v3171_v38 = vld [vmem:[#allocation10 + $0x194] ss:$8 sps:$4 sm:$0xff]  }
 0x1dd   :  { %v741_v52 = vadd.f32 %v716_v35, %v648_v45  ;;  %v652_v53 = vpop.f32.mrb[15].mxu0  ;;  %1255 = vmatmul.mubr.bf16.vlgmr.msra.gmra.mrb[16].mxu0 %v753_v44  ;;  %v689_v2 = vadd.f32 %v688_v63, %v436_v12  ;;  %v690_v56 = vpop.f32.mrb[13].mxu1  ;;  %v3133_v12 = vld [vmem:[#allocation10 + $0x130] ss:$8 sps:$4 sm:$0xff]   ;;  %v3168_v35 = vld [vmem:[#allocation11 + $0x164] ss:$8 sps:$4 sm:$0xff]  }
 0x1de   :  { %v742_v55 = vadd.f32 %v720_v40, %v650_v50  ;;  %1264 = vmatpush1.bf16.msra.mxu0 %v3115_v41  ;;  %v691_v3 = vadd.f32 %v690_v56, %v438_v13  ;;  %1295 = vmatprep.mubr.bf16.mxu0 %v756_v62  ;;  %v692_v4 = vpop.f32.mrb[14].mxu1  ;;  %v3136_v13 = vld [vmem:[#allocation11 + $0x110] ss:$8 sps:$4 sm:$0xff]   ;;  %v3177_v43 = vld [vmem:[#allocation10 + $0x1a4] ss:$8 sps:$4 sm:$0xff]  }
 0x1df   :  { %v749_v59 = vmax.f32 %v741_v52, 0.0  ;;  %1265 = vmatprep.subr.bf16.mxu0 %v3123_v47  ;;  %v4021_v8 = vadd.f32 %v3998_v61, %v689_v2  ;;  %v693_v9 = vpop.f32.mrb[15].mxu1  ;;  %v3139_v61 = vld [vmem:[#allocation10 + $0x140] ss:$8 sps:$4 sm:$0xff]   ;;  %v3169_v40 = vld [vmem:[#allocation10 + $0x190] ss:$8 sps:$4 sm:$0xff]  }
 0x1e0   :  { %v750_v1 = vmax.f32 %v742_v55, 0.0  ;;  %v744_v17 = vadd.f32 %v728_v0, %v691_v3  ;;  %v3172_v41 = vld [vmem:[#allocation11 + $0x170] ss:$8 sps:$4 sm:$0xff]   ;;  %v3180_v44 = vld [vmem:[#allocation11 + $0x184] ss:$8 sps:$4 sm:$0xff]  }
 0x1e1   :  { %v757_v14 = vpack.c.bf16 %v749_v59, %v749_v59  ;;  %v3175_v45 = vld [vmem:[#allocation10 + $0x1a0] ss:$8 sps:$4 sm:$0xff]   ;;  %v3183_v47 = vld [vmem:[#allocation10 + $0x1b4] ss:$8 sps:$4 sm:$0xff]   ;;  %v3184_v50 = vld [vmem:[#allocation11 + $0x190] ss:$8 sps:$4 sm:$0xff]  }
 0x1e2   :  { %v758_v5 = vpack.c.bf16 %v750_v1, %v750_v1  ;;  %1266 = vmatpush1.bf16.msra.mxu0 %v3121_v57  ;;  %v752_v58 = vmax.f32 %v744_v17, 0.0  ;;  %v3178_v46 = vld [vmem:[#allocation11 + $0x180] ss:$8 sps:$4 sm:$0xff]   ;;  %v3186_v48 = vld [vmem:[#allocation11 + $0x194] ss:$8 sps:$4 sm:$0xff]  }
 0x1e3   :  { %1267 = vmatprep.subr.bf16.mxu0 %v3129_v60  ;;  %v3189_v51 = vld [vmem:[#allocation10 + $0x1c4] ss:$8 sps:$4 sm:$0xff]   ;;  %v3187_v53 = vld [vmem:[#allocation10 + $0x1c0] ss:$8 sps:$4 sm:$0xff]   ;;  %v3195_v55 = vld [vmem:[#allocation10 + $0x1d4] ss:$8 sps:$4 sm:$0xff]  }
 0x1e4   :  { %1669 = vmatprep.mubr.bf16.mxu1 %v758_v5  ;;  %v760_v20 = vpack.c.bf16 %v752_v58, %v752_v58  ;;  %v3192_v52 = vld [vmem:[#allocation11 + $0x1a4] ss:$8 sps:$4 sm:$0xff]   ;;  %v3190_v54 = vld [vmem:[#allocation11 + $0x1a0] ss:$8 sps:$4 sm:$0xff]   ;;  %v3198_v57 = vld [vmem:[#allocation11 + $0x1b4] ss:$8 sps:$4 sm:$0xff]  }
 0x1e5   :  { %1670 = vmatmul.mubr.bf16.vlgmr.msra.gmra.mrb[16].mxu1 %v757_v14  ;;  %v3193_v59 = vld [vmem:[#allocation10 + $0x1d0] ss:$8 sps:$4 sm:$0xff]   ;;  %v3201_v62 = vld [vmem:[#allocation10 + $0x1e4] ss:$8 sps:$4 sm:$0xff]   ;;  %v3199_v0 = vld [vmem:[#allocation10 + $0x1e0] ss:$8 sps:$4 sm:$0xff]  }
 0x1e6   :  { %1268 = vmatpush1.bf16.msra.mxu0 %v3127_v6  ;;  %1679 = vmatpush1.bf16.msra.mxu1 %v3130_v7  ;;  %v3196_v60 = vld [vmem:[#allocation11 + $0x1b0] ss:$8 sps:$4 sm:$0xff]   ;;  %v3204_v63 = vld [vmem:[#allocation11 + $0x1c4] ss:$8 sps:$4 sm:$0xff]   ;;  %v3202_v1 = vld [vmem:[#allocation11 + $0x1c0] ss:$8 sps:$4 sm:$0xff]  }
 0x1e7   :  { %1269 = vmatprep.subr.bf16.mxu0 %v3135_v15  ;;  %1680 = vmatprep.subr.bf16.mxu1 %v3138_v16  ;;  %v3207_v2 = vld [vmem:[#allocation10 + $0x1f4] ss:$8 sps:$4 sm:$0xff]   ;;  %v3205_v3 = vld [vmem:[#allocation10 + $0x1f0] ss:$8 sps:$4 sm:$0xff]   ;;  %v747_v5 = vmax.f32 %v4016_v42, 0.0  ;;  %v751_v42 = vmax.f32 %v4021_v8, 0.0 }
 0x1e8   :  { %1710 = vmatprep.mubr.bf16.mxu1 %v760_v20  ;;  %v3210_v56 = vld [vmem:[#allocation11 + $0x1d4] ss:$8 sps:$4 sm:$0xff]   ;;  %v3208_v4 = vld [vmem:[#allocation11 + $0x1d0] ss:$8 sps:$4 sm:$0xff]   ;;  %v3213_v6 = vld [vmem:[#allocation11 + $0x1e4] ss:$8 sps:$4 sm:$0xff]  }
 0x1e9   :  { %v3219_v7 = vld [vmem:[#allocation13 + $0x4] ss:$8 sps:$4 sm:$0xff]   ;;  %v3211_v9 = vld [vmem:[#allocation11 + $0x1e0] ss:$8 sps:$4 sm:$0xff]   ;;  %v755_v15 = vpack.c.bf16 %v747_v5, %v747_v5  ;;  %v3216_v16 = vld [vmem:[#allocation11 + $0x1f4] ss:$8 sps:$4 sm:$0xff]  }
 0x1ea   :  { %1270 = vmatpush1.bf16.msra.mxu0 %v3133_v12  ;;  %1681 = vmatpush1.bf16.msra.mxu1 %v3136_v13  ;;  %v3217_v14 = vld [vmem:[#allocation13] ss:$8 sps:$4 sm:$0xff]   ;;  %v3222_v17 = vld [vmem:[#allocation13 + $0x14] ss:$8 sps:$4 sm:$0xff]   ;;  %v3214_v58 = vld [vmem:[#allocation11 + $0x1f0] ss:$8 sps:$4 sm:$0xff]  }
 0x1eb   :  { %1271 = vmatprep.subr.bf16.mxu0 %v3141_v18  ;;  %1682 = vmatprep.subr.bf16.mxu1 %v3144_v19  ;;  %v3220_v12 = vld [vmem:[#allocation13 + $0x10] ss:$8 sps:$4 sm:$0xff]   ;;  %v3225_v13 = vld [vmem:[#allocation13 + $0x24] ss:$8 sps:$4 sm:$0xff]   ;;  %v3223_v19 = vld [vmem:[#allocation13 + $0x20] ss:$8 sps:$4 sm:$0xff]  }
 0x1ec   :  { %v3228_v18 = vld [vmem:[#allocation14 + $0x4] ss:$8 sps:$4 sm:$0xff]   ;;  %v3226_v20 = vld [vmem:[#allocation14] ss:$8 sps:$4 sm:$0xff]  }
 0x1ed   :  { %v3237_v8 = vld [vmem:[#allocation13 + $0x44] ss:$8 sps:$4 sm:$0xff]   ;;  %v3295_v5 = vld [vmem:[#allocation13 + $0xe0] ss:$8 sps:$4 sm:$0xff]  }
 0x1ee   :  { %1272 = vmatpush1.bf16.msra.mxu0 %v3139_v61  ;;  %1683 = vmatpush1.bf16.msra.mxu1 %v3142_v21  ;;  %v759_v61 = vpack.c.bf16 %v751_v42, %v751_v42  ;;  %v3231_v21 = vld [vmem:[#allocation13 + $0x34] ss:$8 sps:$4 sm:$0xff]   ;;  %v3313_v42 = vld [vmem:[#allocation16 + $0x40] sm:$0xff]  }
 0x1ef   :  { %1273 = vmatprep.subr.bf16.mxu0 %v3147_v22  ;;  %1684 = vmatprep.subr.bf16.mxu1 %v3150_v23  ;;  %v3234_v22 = vld [vmem:[#allocation14 + $0x14] ss:$8 sps:$4 sm:$0xff]   ;;  %v3229_v23 = vld [vmem:[#allocation13 + $0x30] ss:$8 sps:$4 sm:$0xff]  }
 0x1f2   :  { %1274 = vmatpush1.bf16.msra.mxu0 %v3145_v24  ;;  %1685 = vmatpush1.bf16.msra.mxu1 %v3148_v25  ;;  %v3232_v24 = vld [vmem:[#allocation14 + $0x10] ss:$8 sps:$4 sm:$0xff]   ;;  %v3240_v25 = vld [vmem:[#allocation14 + $0x24] ss:$8 sps:$4 sm:$0xff]  }
 0x1f3   :  { %1275 = vmatprep.subr.bf16.mxu0 %v3153_v26  ;;  %1686 = vmatprep.subr.bf16.mxu1 %v3156_v27  ;;  %v3235_v26 = vld [vmem:[#allocation13 + $0x40] ss:$8 sps:$4 sm:$0xff]  }
 0x1f4   :  { %v3238_v27 = vld [vmem:[#allocation14 + $0x20] ss:$8 sps:$4 sm:$0xff]  }
 0x1f6   :  { %1276 = vmatpush1.bf16.msra.mxu0 %v3151_v28  ;;  %1687 = vmatpush1.bf16.msra.mxu1 %v3154_v29  ;;  %v3243_v28 = vld [vmem:[#allocation13 + $0x54] ss:$8 sps:$4 sm:$0xff]  }
 0x1f7   :  { %1277 = vmatprep.subr.bf16.mxu0 %v3159_v30  ;;  %1688 = vmatprep.subr.bf16.mxu1 %v3162_v31  ;;  %v3246_v29 = vld [vmem:[#allocation14 + $0x34] ss:$8 sps:$4 sm:$0xff]   ;;  %v3241_v30 = vld [vmem:[#allocation13 + $0x50] ss:$8 sps:$4 sm:$0xff]  }
 0x1f8   :  { %v3244_v31 = vld [vmem:[#allocation14 + $0x30] ss:$8 sps:$4 sm:$0xff]  }
 0x1fa   :  { %1278 = vmatpush1.bf16.msra.mxu0 %v3157_v32  ;;  %1689 = vmatpush1.bf16.msra.mxu1 %v3160_v33  ;;  %v3249_v32 = vld [vmem:[#allocation13 + $0x64] ss:$8 sps:$4 sm:$0xff]  }
 0x1fb   :  { %1279 = vmatprep.subr.bf16.mxu0 %v3165_v34  ;;  %1690 = vmatprep.subr.bf16.mxu1 %v3168_v35  ;;  %v3252_v33 = vld [vmem:[#allocation14 + $0x44] ss:$8 sps:$4 sm:$0xff]   ;;  %v3247_v34 = vld [vmem:[#allocation13 + $0x60] ss:$8 sps:$4 sm:$0xff]  }
 0x1fc   :  { %v3250_v35 = vld [vmem:[#allocation14 + $0x40] ss:$8 sps:$4 sm:$0xff]  }
 0x1fe   :  { %1280 = vmatpush1.bf16.msra.mxu0 %v3163_v36  ;;  %1691 = vmatpush1.bf16.msra.mxu1 %v3166_v37  ;;  %v3255_v36 = vld [vmem:[#allocation13 + $0x74] ss:$8 sps:$4 sm:$0xff]  }
 0x1ff   :  { %1281 = vmatprep.subr.bf16.mxu0 %v3171_v38  ;;  %1692 = vmatprep.subr.bf16.mxu1 %v3174_v39  ;;  %v3258_v37 = vld [vmem:[#allocation14 + $0x54] ss:$8 sps:$4 sm:$0xff]   ;;  %v3253_v38 = vld [vmem:[#allocation13 + $0x70] ss:$8 sps:$4 sm:$0xff]  }
 0x200   :  { %v3256_v39 = vld [vmem:[#allocation14 + $0x50] ss:$8 sps:$4 sm:$0xff]  }
 0x202   :  { %1282 = vmatpush1.bf16.msra.mxu0 %v3169_v40  ;;  %1693 = vmatpush1.bf16.msra.mxu1 %v3172_v41  ;;  %v3261_v40 = vld [vmem:[#allocation13 + $0x84] ss:$8 sps:$4 sm:$0xff]  }
 0x203   :  { %1283 = vmatprep.subr.bf16.mxu0 %v3177_v43  ;;  %1694 = vmatprep.subr.bf16.mxu1 %v3180_v44  ;;  %v3264_v41 = vld [vmem:[#allocation14 + $0x64] ss:$8 sps:$4 sm:$0xff]   ;;  %v3259_v43 = vld [vmem:[#allocation13 + $0x80] ss:$8 sps:$4 sm:$0xff]  }
 0x204   :  { %v3262_v44 = vld [vmem:[#allocation14 + $0x60] ss:$8 sps:$4 sm:$0xff]  }
 0x206   :  { %1284 = vmatpush1.bf16.msra.mxu0 %v3175_v45  ;;  %1695 = vmatpush1.bf16.msra.mxu1 %v3178_v46  ;;  %v3267_v45 = vld [vmem:[#allocation13 + $0x94] ss:$8 sps:$4 sm:$0xff]  }
 0x207   :  { %1285 = vmatprep.subr.bf16.mxu0 %v3183_v47  ;;  %1696 = vmatprep.subr.bf16.mxu1 %v3186_v48  ;;  %v3270_v46 = vld [vmem:[#allocation14 + $0x74] ss:$8 sps:$4 sm:$0xff]   ;;  %v3265_v47 = vld [vmem:[#allocation13 + $0x90] ss:$8 sps:$4 sm:$0xff]  }
 0x208   :  { %v3268_v48 = vld [vmem:[#allocation14 + $0x70] ss:$8 sps:$4 sm:$0xff]  }
 0x20a   :  { %1286 = vmatpush1.bf16.msra.mxu0 %v3181_v49  ;;  %1697 = vmatpush1.bf16.msra.mxu1 %v3184_v50  ;;  %v3273_v49 = vld [vmem:[#allocation13 + $0xa4] ss:$8 sps:$4 sm:$0xff]  }
 0x20b   :  { %1287 = vmatprep.subr.bf16.mxu0 %v3189_v51  ;;  %1698 = vmatprep.subr.bf16.mxu1 %v3192_v52  ;;  %v3276_v50 = vld [vmem:[#allocation14 + $0x84] ss:$8 sps:$4 sm:$0xff]   ;;  %v3271_v51 = vld [vmem:[#allocation13 + $0xa0] ss:$8 sps:$4 sm:$0xff]  }
 0x20c   :  { %v3274_v52 = vld [vmem:[#allocation14 + $0x80] ss:$8 sps:$4 sm:$0xff]  }
 0x20e   :  { %1288 = vmatpush1.bf16.msra.mxu0 %v3187_v53  ;;  %1699 = vmatpush1.bf16.msra.mxu1 %v3190_v54  ;;  %v3279_v53 = vld [vmem:[#allocation13 + $0xb4] ss:$8 sps:$4 sm:$0xff]  }
 0x20f   :  { %1289 = vmatprep.subr.bf16.mxu0 %v3195_v55  ;;  %1700 = vmatprep.subr.bf16.mxu1 %v3198_v57  ;;  %v3282_v54 = vld [vmem:[#allocation14 + $0x94] ss:$8 sps:$4 sm:$0xff]   ;;  %v3277_v55 = vld [vmem:[#allocation13 + $0xb0] ss:$8 sps:$4 sm:$0xff]  }
 0x210   :  { %v3280_v57 = vld [vmem:[#allocation14 + $0x90] ss:$8 sps:$4 sm:$0xff]  }
 0x212   :  { %1290 = vmatpush1.bf16.msra.mxu0 %v3193_v59  ;;  %1701 = vmatpush1.bf16.msra.mxu1 %v3196_v60  ;;  %v3285_v59 = vld [vmem:[#allocation13 + $0xc4] ss:$8 sps:$4 sm:$0xff]  }
 0x213   :  { %1291 = vmatprep.subr.bf16.mxu0 %v3201_v62  ;;  %1702 = vmatprep.subr.bf16.mxu1 %v3204_v63  ;;  %v3288_v60 = vld [vmem:[#allocation14 + $0xa4] ss:$8 sps:$4 sm:$0xff]   ;;  %v3283_v62 = vld [vmem:[#allocation13 + $0xc0] ss:$8 sps:$4 sm:$0xff]  }
 0x214   :  { %v3286_v63 = vld [vmem:[#allocation14 + $0xa0] ss:$8 sps:$4 sm:$0xff]  }
 0x216   :  { %1292 = vmatpush1.bf16.msra.mxu0 %v3199_v0  ;;  %1703 = vmatpush1.bf16.msra.mxu1 %v3202_v1  ;;  %v3291_v0 = vld [vmem:[#allocation13 + $0xd4] ss:$8 sps:$4 sm:$0xff]  }
 0x217   :  { %1293 = vmatprep.subr.bf16.mxu0 %v3207_v2  ;;  %1704 = vmatprep.subr.bf16.mxu1 %v3210_v56  ;;  %v3294_v1 = vld [vmem:[#allocation14 + $0xb4] ss:$8 sps:$4 sm:$0xff]   ;;  %v3289_v2 = vld [vmem:[#allocation13 + $0xd0] ss:$8 sps:$4 sm:$0xff]  }
 0x218   :  { %v3292_v56 = vld [vmem:[#allocation14 + $0xb0] ss:$8 sps:$4 sm:$0xff]  }
 0x21a   :  { %1294 = vmatpush1.bf16.msra.mxu0 %v3205_v3  ;;  %1705 = vmatpush1.bf16.msra.mxu1 %v3208_v4  ;;  %v3297_v3 = vld [vmem:[#allocation13 + $0xe4] ss:$8 sps:$4 sm:$0xff]  }
 0x21b   :  { %1706 = vmatprep.subr.bf16.mxu1 %v3213_v6  ;;  %1964 = vmatprep.subr.bf16.mxu0 %v3219_v7  ;;  %v3300_v4 = vld [vmem:[#allocation14 + $0xc4] ss:$8 sps:$4 sm:$0xff]   ;;  %v3298_v6 = vld [vmem:[#allocation14 + $0xc0] ss:$8 sps:$4 sm:$0xff]   ;;  %v3303_v7 = vld [vmem:[#allocation13 + $0xf4] ss:$8 sps:$4 sm:$0xff]  }
 0x21d   :  { %1296 = vmatmul.mubr.bf16.vlgmr.msra.gmra.mrb[16].mxu0 %v755_v15  ;;  %v3304_v15 = vld [vmem:[#allocation14 + $0xd0] ss:$8 sps:$4 sm:$0xff]  }
 0x21e   :  { %1707 = vmatpush1.bf16.msra.mxu1 %v3211_v9  ;;  %1965 = vmatpush1.bf16.msra.mxu0 %v3217_v14  ;;  %v3306_v9 = vld [vmem:[#allocation14 + $0xd4] ss:$8 sps:$4 sm:$0xff]   ;;  %v3301_v14 = vld [vmem:[#allocation13 + $0xf0] ss:$8 sps:$4 sm:$0xff]  }
 0x21f   :  { %1708 = vmatprep.subr.bf16.mxu1 %v3216_v16  ;;  %1966 = vmatprep.subr.bf16.mxu0 %v3222_v17  ;;  %v3309_v16 = vld [vmem:[#allocation14 + $0xe4] ss:$8 sps:$4 sm:$0xff]   ;;  %v3307_v17 = vld [vmem:[#allocation14 + $0xe0] ss:$8 sps:$4 sm:$0xff]  }
 0x222   :  { %1709 = vmatpush1.bf16.msra.mxu1 %v3214_v58  ;;  %1967 = vmatpush1.bf16.msra.mxu0 %v3220_v12  ;;  %v3312_v58 = vld [vmem:[#allocation14 + $0xf4] ss:$8 sps:$4 sm:$0xff]   ;;  %v3310_v12 = vld [vmem:[#allocation14 + $0xf0] ss:$8 sps:$4 sm:$0xff]  }
 0x223   :  { %1968 = vmatprep.subr.bf16.mxu0 %v3225_v13  ;;  %2178 = vmatprep.subr.bf16.mxu1 %v3228_v18  ;;  %v3318_v13 = vld [vmem:[#allocation17 + $0x40] sm:$0xff]  }
 0x224   :  { %v890_v18 = vld [vmem:[#allocation20 + $0x1] ss:$4 sm:$0x3] }
 0x225   :  { %1711 = vmatmul.mubr.bf16.vlgmr.msra.gmra.mrb[16].mxu1 %v759_v61 }
 0x226   :  { %1969 = vmatpush1.bf16.msra.mxu0 %v3223_v19  ;;  %2179 = vmatpush1.bf16.msra.mxu1 %v3226_v20  ;;  %v895_v19 = vrot.slane %v890_v18, %v4001_v10  ;;  %v899_v20 = vrot.slane %v890_v18, %v4004_v11 }
 0x227   :  { %1970 = vmatprep.subr.bf16.mxu0 %v3231_v21  ;;  %2180 = vmatprep.subr.bf16.mxu1 %v3234_v22 }
 0x22a   :  { %1971 = vmatpush1.bf16.msra.mxu0 %v3229_v23  ;;  %2181 = vmatpush1.bf16.msra.mxu1 %v3232_v24 }
 0x22b   :  { %1972 = vmatprep.subr.bf16.mxu0 %v3237_v8  ;;  %2182 = vmatprep.subr.bf16.mxu1 %v3240_v25  ;;  %v1305_v8 = vld [vmem:[#allocation20 + $0x11] ss:$4 sm:$0x3] }
 0x22e   :  { %1973 = vmatpush1.bf16.msra.mxu0 %v3235_v26  ;;  %2183 = vmatpush1.bf16.msra.mxu1 %v3238_v27 }
 0x22f   :  { %1974 = vmatprep.subr.bf16.mxu0 %v3243_v28  ;;  %2184 = vmatprep.subr.bf16.mxu1 %v3246_v29  ;;  %v1310_v28 = vrot.slane %v1305_v8, %v4001_v10 }
 0x232   :  { %1975 = vmatpush1.bf16.msra.mxu0 %v3241_v30  ;;  %2185 = vmatpush1.bf16.msra.mxu1 %v3244_v31  ;;  %v1314_v30 = vrot.slane %v1305_v8, %v4004_v11  ;;  %v3314_v31 = vld [vmem:[#allocation16] sm:$0xff]  }
 0x233   :  { %1976 = vmatprep.subr.bf16.mxu0 %v3249_v32  ;;  %2186 = vmatprep.subr.bf16.mxu1 %v3252_v33  ;;  %v3315_v33 = vld [vmem:[#allocation16 + $0x48] sm:$0xff]  }
 0x236   :  { %1977 = vmatpush1.bf16.msra.mxu0 %v3247_v34  ;;  %2187 = vmatpush1.bf16.msra.mxu1 %v3250_v35 }
 0x237   :  { %1978 = vmatprep.subr.bf16.mxu0 %v3255_v36  ;;  %2188 = vmatprep.subr.bf16.mxu1 %v3258_v37 }
 0x23a   :  { %1979 = vmatpush1.bf16.msra.mxu0 %v3253_v38  ;;  %2189 = vmatpush1.bf16.msra.mxu1 %v3256_v39  ;;  %v3316_v39 = vld [vmem:[#allocation16 + $0x8] sm:$0xff]  }
 0x23b   :  { %1980 = vmatprep.subr.bf16.mxu0 %v3261_v40  ;;  %2190 = vmatprep.subr.bf16.mxu1 %v3264_v41 }
 0x23e   :  { %1981 = vmatpush1.bf16.msra.mxu0 %v3259_v43  ;;  %2191 = vmatpush1.bf16.msra.mxu1 %v3262_v44  ;;  %v3317_v43 = vld [vmem:[#allocation16 + $0x50] sm:$0xff]  }
 0x23f   :  { %1982 = vmatprep.subr.bf16.mxu0 %v3267_v45  ;;  %2192 = vmatprep.subr.bf16.mxu1 %v3270_v46  ;;  %v3319_v46 = vld [vmem:[#allocation16 + $0x10] sm:$0xff]  }
 0x242   :  { %1983 = vmatpush1.bf16.msra.mxu0 %v3265_v47  ;;  %2193 = vmatpush1.bf16.msra.mxu1 %v3268_v48  ;;  %v3320_v47 = vld [vmem:[#allocation17] sm:$0xff]  }
 0x243   :  { %1984 = vmatprep.subr.bf16.mxu0 %v3273_v49  ;;  %2194 = vmatprep.subr.bf16.mxu1 %v3276_v50  ;;  %v3321_v49 = vld [vmem:[#allocation16 + $0x58] sm:$0xff]   ;;  %v3322_v50 = vld [vmem:[#allocation17 + $0x48] sm:$0xff]  }
 0x246   :  { %1985 = vmatpush1.bf16.msra.mxu0 %v3271_v51  ;;  %2195 = vmatpush1.bf16.msra.mxu1 %v3274_v52  ;;  %v3323_v51 = vld [vmem:[#allocation16 + $0x18] sm:$0xff]   ;;  %v3324_v52 = vld [vmem:[#allocation17 + $0x8] sm:$0xff]  }
 0x247   :  { %1986 = vmatprep.subr.bf16.mxu0 %v3279_v53  ;;  %2196 = vmatprep.subr.bf16.mxu1 %v3282_v54  ;;  %v3325_v53 = vld [vmem:[#allocation16 + $0x60] sm:$0xff]   ;;  %v3326_v54 = vld [vmem:[#allocation17 + $0x50] sm:$0xff]  }
 0x24a   :  { %1987 = vmatpush1.bf16.msra.mxu0 %v3277_v55  ;;  %2197 = vmatpush1.bf16.msra.mxu1 %v3280_v57  ;;  %v3327_v55 = vld [vmem:[#allocation16 + $0x20] sm:$0xff]   ;;  %v3328_v57 = vld [vmem:[#allocation17 + $0x10] sm:$0xff]  }
 0x24b   :  { %1988 = vmatprep.subr.bf16.mxu0 %v3285_v59  ;;  %2198 = vmatprep.subr.bf16.mxu1 %v3288_v60  ;;  %v3329_v59 = vld [vmem:[#allocation16 + $0x68] sm:$0xff]   ;;  %v3330_v60 = vld [vmem:[#allocation17 + $0x58] sm:$0xff]  }
 0x24e   :  { %1989 = vmatpush1.bf16.msra.mxu0 %v3283_v62  ;;  %2199 = vmatpush1.bf16.msra.mxu1 %v3286_v63  ;;  %v3331_v62 = vld [vmem:[#allocation16 + $0x28] sm:$0xff]   ;;  %v3332_v63 = vld [vmem:[#allocation17 + $0x18] sm:$0xff]  }
 0x24f   :  { %1990 = vmatprep.subr.bf16.mxu0 %v3291_v0  ;;  %2200 = vmatprep.subr.bf16.mxu1 %v3294_v1  ;;  %v3333_v0 = vld [vmem:[#allocation16 + $0x70] sm:$0xff]   ;;  %v3334_v1 = vld [vmem:[#allocation17 + $0x60] sm:$0xff]  }
 0x252   :  { %1991 = vmatpush1.bf16.msra.mxu0 %v3289_v2  ;;  %2201 = vmatpush1.bf16.msra.mxu1 %v3292_v56  ;;  %v3335_v2 = vld [vmem:[#allocation16 + $0x30] sm:$0xff]   ;;  %v3336_v56 = vld [vmem:[#allocation17 + $0x20] sm:$0xff]  }
 0x253   :  { %1992 = vmatprep.subr.bf16.mxu0 %v3297_v3  ;;  %2202 = vmatprep.subr.bf16.mxu1 %v3300_v4  ;;  %v3337_v3 = vld [vmem:[#allocation16 + $0x78] sm:$0xff]   ;;  %v3338_v4 = vld [vmem:[#allocation17 + $0x68] sm:$0xff]  }
 0x256   :  { %1993 = vmatpush1.bf16.msra.mxu0 %v3295_v5  ;;  %2203 = vmatpush1.bf16.msra.mxu1 %v3298_v6  ;;  %v3339_v5 = vld [vmem:[#allocation16 + $0x38] sm:$0xff]   ;;  %v3340_v6 = vld [vmem:[#allocation17 + $0x28] sm:$0xff]  }
 0x257   :  { %1994 = vmatprep.subr.bf16.mxu0 %v3303_v7  ;;  %2204 = vmatprep.subr.bf16.mxu1 %v3306_v9  ;;  %v3341_v7 = vld [vmem:[#allocation17 + $0x70] sm:$0xff]  }
 0x258   :  { %v3342_v9 = vld [vmem:[#allocation17 + $0x30] sm:$0xff]  }
 0x25a   :  { %1995 = vmatpush1.bf16.msra.mxu0 %v3301_v14  ;;  %2205 = vmatpush1.bf16.msra.mxu1 %v3304_v15  ;;  %v3343_v14 = vld [vmem:[#allocation17 + $0x78] sm:$0xff]  }
 0x25b   :  { %2206 = vmatprep.subr.bf16.mxu1 %v3309_v16  ;;  %2921 = vmatprep.subr.bf16.mxu0 %v3313_v42  ;;  %v3344_v15 = vld [vmem:[#allocation17 + $0x38] sm:$0xff]   ;;  %v1792_v16 = vld [vmem:[#allocation20 + $0x2] ss:$4 sm:$0x3] }
 0x25e   :  { %2207 = vmatpush1.bf16.msra.mxu1 %v3307_v17  ;;  %v1797_v17 = vrot.slane %v1792_v16, %v4001_v10 }
 0x25f   :  { %2208 = vmatprep.subr.bf16.mxu1 %v3312_v58  ;;  %v1801_v58 = vrot.slane %v1792_v16, %v4004_v11 }
 0x262   :  { %2209 = vmatpush1.bf16.msra.mxu1 %v3310_v12 }
 0x263   :  { %2943 = vmatprep.subr.bf16.mxu1 %v3318_v13 }
 0x2f0   :  { %v1297_v61 = vpop.f32.mrb[16].mxu0 }
 0x2f1   :  { %v2973_v21 = vadd.f32 %v1297_v61, %v895_v19  ;;  %v1299_v22 = vpop.f32.mrb[17].mxu0 }
 0x2f2   :  { %v2974_v23 = vadd.f32 %v1299_v22, %v899_v20  ;;  %v1301_v24 = vpop.f32.mrb[18].mxu0  ;;  %v2006_v20 = vld [vmem:[#allocation20 + $0x12] ss:$4 sm:$0x3] }
 0x2f3   :  { %v1719_v25 = vmax.f32 %v2973_v21, 0.0  ;;  %v1302_v26 = vpop.f32.mrb[19].mxu0  ;;  %v2015_v8 = vrot.slane %v2006_v20, %v4004_v11 }
 0x2f4   :  { %v1720_v27 = vmax.f32 %v2974_v23, 0.0  ;;  %v2011_v23 = vrot.slane %v2006_v20, %v4001_v10 }
 0x2f5   :  { %v1721_v32 = vpack.c.bf16 %v1719_v25, %v1719_v25 }
 0x2f6   :  { %v1722_v29 = vpack.c.bf16 %v1720_v27, %v1720_v27 }
 0x2f8   :  { %v1712_v34 = vpop.f32.mrb[16].mxu1  ;;  %1996 = vmatprep.mubr.bf16.mxu0 %v1722_v29 }
 0x2f9   :  { %v2975_v35 = vadd.f32 %v1712_v34, %v1310_v28  ;;  %v1714_v36 = vpop.f32.mrb[17].mxu1  ;;  %1997 = vmatmul.mubr.bf16.vlgmr.msra.gmra.mrb[20].mxu0 %v1721_v32 }
 0x2fa   :  { %v2976_v37 = vadd.f32 %v1714_v36, %v1314_v30  ;;  %v1716_v38 = vpop.f32.mrb[18].mxu1  ;;  %2922 = vmatpush3.bf16.msra.mxu0 %v3314_v31 }
 0x2fb   :  { %v1723_v40 = vmax.f32 %v2975_v35, 0.0  ;;  %v1717_v41 = vpop.f32.mrb[19].mxu1  ;;  %2923 = vmatprep.subr.bf16.mxu0 %v3315_v33 }
 0x2fc   :  { %v1724_v44 = vmax.f32 %v2976_v37, 0.0 }
 0x2fd   :  { %v1725_v48 = vpack.c.bf16 %v1723_v40, %v1723_v40 }
 0x2fe   :  { %v1726_v45 = vpack.c.bf16 %v1724_v44, %v1724_v44  ;;  %2924 = vmatpush3.bf16.msra.mxu0 %v3316_v39  ;;  %v3689_v39 = vmov 0.0  }
 0x2ff   :  { %2925 = vmatprep.subr.bf16.mxu0 %v3317_v43  ;;  %v2904_v43 = vld [vmem:[#allocation20 + $0x13] ss:$0 sm:$0xff] }
 0x300   :  { %2210 = vmatprep.mubr.bf16.mxu1 %v1726_v45 }
 0x301   :  { %2211 = vmatmul.mubr.bf16.vlgmr.msra.gmra.mrb[20].mxu1 %v1725_v48 }
 0x302   :  { %2926 = vmatpush3.bf16.msra.mxu0 %v3319_v46  ;;  %2944 = vmatpush3.bf16.msra.mxu1 %v3320_v47 }
 0x303   :  { %2927 = vmatprep.subr.bf16.mxu0 %v3321_v49  ;;  %2945 = vmatprep.subr.bf16.mxu1 %v3322_v50  ;;  %v2586_v50 = vld [vmem:[#allocation22] sm:$0x3] }
 0x306   :  { %2928 = vmatpush3.bf16.msra.mxu0 %v3323_v51  ;;  %2946 = vmatpush3.bf16.msra.mxu1 %v3324_v52  ;;  %v2887_v51 = vld [vmem:[#allocation20 + $0x3] ss:$0 sm:$0xff] }
 0x307   :  { %2929 = vmatprep.subr.bf16.mxu0 %v3325_v53  ;;  %2947 = vmatprep.subr.bf16.mxu1 %v3326_v54 }
 0x30a   :  { %2930 = vmatpush3.bf16.msra.mxu0 %v3327_v55  ;;  %2948 = vmatpush3.bf16.msra.mxu1 %v3328_v57 }
 0x30b   :  { %2931 = vmatprep.subr.bf16.mxu0 %v3329_v59  ;;  %2949 = vmatprep.subr.bf16.mxu1 %v3330_v60  ;;  %v2585_v59 = vld [vmem:[#allocation19] sm:$0x1] }
 0x30e   :  { %2932 = vmatpush3.bf16.msra.mxu0 %v3331_v62  ;;  %2950 = vmatpush3.bf16.msra.mxu1 %v3332_v63 }
 0x30f   :  { %2933 = vmatprep.subr.bf16.mxu0 %v3333_v0  ;;  %2951 = vmatprep.subr.bf16.mxu1 %v3334_v1 }
 0x312   :  { %2934 = vmatpush3.bf16.msra.mxu0 %v3335_v2  ;;  %2952 = vmatpush3.bf16.msra.mxu1 %v3336_v56 }
 0x313   :  { %2935 = vmatprep.subr.bf16.mxu0 %v3337_v3  ;;  %2953 = vmatprep.subr.bf16.mxu1 %v3338_v4 }
 0x316   :  { %2936 = vmatpush3.bf16.msra.mxu0 %v3339_v5  ;;  %2954 = vmatpush3.bf16.msra.mxu1 %v3340_v6 }
 0x317   :  { %2955 = vmatprep.subr.bf16.mxu1 %v3341_v7  ;;  %2967 = vmatprep.subr.bf16.mxu0 %v3689_v39 }
 0x31a   :  { %2956 = vmatpush3.bf16.msra.mxu1 %v3342_v9 }
 0x31b   :  { %2957 = vmatprep.subr.bf16.mxu1 %v3343_v14 }
 0x31e   :  { %2958 = vmatpush3.bf16.msra.mxu1 %v3344_v15 }
 0x3cc   :  { %v1998_v12 = vpop.f32.mrb[20].mxu0 }
 0x3cd   :  { %v1999_v42 = vadd.f32 %v1998_v12, %v1797_v17  ;;  %v2000_v13 = vpop.f32.mrb[21].mxu0 }
 0x3ce   :  { %v2001_v18 = vadd.f32 %v2000_v13, %v1801_v58  ;;  %v2002_v19 = vpop.f32.mrb[22].mxu0 }
 0x3cf   :  { %v2219_v61 = vmax.f32 %v1999_v42, 0.0  ;;  %v2003_v21 = vpop.f32.mrb[23].mxu0 }
 0x3d0   :  { %v2220_v22 = vmax.f32 %v2001_v18, 0.0 }
 0x3d1   :  { %v2221_v25 = vpack.c.bf16 %v2219_v61, %v2219_v61 }
 0x3d2   :  { %v2222_v24 = vpack.c.bf16 %v2220_v22, %v2220_v22 }
 0x3d4   :  { %v2212_v26 = vpop.f32.mrb[20].mxu1  ;;  %2424 = vmatprep.mubr.bf16.mxu0 %v2222_v24 }
 0x3d5   :  { %v2213_v27 = vadd.f32 %v2212_v26, %v2011_v23  ;;  %v2214_v28 = vpop.f32.mrb[21].mxu1  ;;  %2425 = vmatmul.mubr.bf16.vlgmr.msra.gmra.mrb[24].mxu0 %v2221_v25 }
 0x3d6   :  { %v2215_v29 = vadd.f32 %v2214_v28, %v2015_v8  ;;  %v2216_v30 = vpop.f32.mrb[22].mxu1  ;;  %2969 = vmatprep.mubr.msk.bf16.mxu0 %vm3690_vm3, %v3689_v39 }
 0x3d7   :  { %v2223_v31 = vmax.f32 %v2213_v27, 0.0  ;;  %v2217_v32 = vpop.f32.mrb[23].mxu1 }
 0x3d8   :  { %v2224_v33 = vmax.f32 %v2215_v29, 0.0 }
 0x3d9   :  { %v2225_v35 = vpack.c.bf16 %v2223_v31, %v2223_v31 }
 0x3da   :  { %v2226_v34 = vpack.c.bf16 %v2224_v33, %v2224_v33 }
 0x3dc   :  { %2565 = vmatprep.mubr.bf16.mxu1 %v2226_v34 }
 0x3dd   :  { %2566 = vmatmul.mubr.bf16.vlgmr.msra.gmra.mrb[24].mxu1 %v2225_v35 }
 0x4a8   :  { %v2937_v36 = vpop.f32.mrb[24].mxu0 }
 0x4a9   :  { %v2938_v10 = vpop.f32.mrb[25].mxu0 }
 0x4aa   :  { %v2939_v37 = vadd.f32 %v2938_v10, %v2937_v36  ;;  %v2940_v38 = vpop.f32.mrb[26].mxu0 }
 0x4ab   :  { %v2941_v11 = vpop.f32.mrb[27].mxu0 }
 0x4ac   :  { %v2427_v52 = vadd.f32 %v2939_v37, %v2887_v51 }
 0x4ae   :  { %v2573_v53 = vmax.f32 %v2427_v52, 0.0 }
 0x4b0   :  { %v2959_v40 = vpop.f32.mrb[24].mxu1  ;;  %v2574_v54 = vpack.c.bf16 %v2573_v53, %v2573_v53 }
 0x4b1   :  { %v2960_v41 = vpop.f32.mrb[25].mxu1 }
 0x4b2   :  { %v2961_v44 = vadd.f32 %v2960_v41, %v2959_v40  ;;  %v2962_v45 = vpop.f32.mrb[26].mxu1 }
 0x4b3   :  { %v2963_v46 = vpop.f32.mrb[27].mxu1 }
 0x4b4   :  { %v2568_v47 = vadd.f32 %v2961_v44, %v2904_v43 }
 0x4b6   :  { %v2575_v48 = vmax.f32 %v2568_v47, 0.0 }
 0x4b8   :  { %v2576_v49 = vpack.c.bf16 %v2575_v48, %v2575_v48 }
 0x4ba   :  { %2578 = vrot.lane.b32.xlu0 %v2576_v49, %s3677_s18  ;;  %s3631_s18 = scalar_lea.vmem %s2641_s15, 32 }
 0x4bb   :  { %p3632_p6 = scmp.ne.s32.totalorder %s2641_s15, %s3631_s18  ;;  %p3637_p8 = scmp.lt.s32.totalorder %s3631_s18, %s3631_s18 }
 0x4bd   :  { %p3638_p9 = por %p3637_p8, %p3636_p7 }
 0x4be   :  { %2589 = vperm.xlu0 %3008, %v2586_v50  }
 0x4bf   :  { %p3639_p10 = pnand %p3638_p9, %p3632_p6 }
 0x52c   :  { %v2579_v55 = vpop.permute.xlu0 %2578 }
 0x52d   :  { %v2583_v57 = vsel %vm2580_vm4, %v2574_v54, %v2579_v55 }
 0x52e   :  { %2968 = vmatpush3.bf16.xpose.msra.mxu0 %v2583_v57 }
 0x535   :  { %2970 = vmatmul.mubr.bf16.vlgmr.msra.gmra.mrb[28].mxu0 %v2585_v59 }
 0x53d   :  { %v2590_v60 = vpop.permute.xlu0 %2589 }
 0x608   :  { %v2626_v62 = vpop.f32.mrb[28].mxu0 }
 0x609   :  { %v2627_v63 = vadd.f32 %v2626_v62, %v2590_v60  ;;  %v2971_v0 = vpop.f32.mrb[29].mxu0 }
 0x60a   :  { %v2629_v1 = vpop.f32.mrb[30].mxu0 }
 0x60b   :  { %v2972_v2 = vpop.f32.mrb[31].mxu0  ;;  %2633 = vst.msk [vmem:[#allocation23] sm:$0x3] %vm2632_vm5, %v2627_v63 }
 0x60c   :  { %3642 = shalt.err (!%p3639_p10)
}
 0x60d   :  { %s3643_s28 = scalar_lea.hbm %s4059_s13, 32 }
 0x60e   :  { %p3644_p11 = scmp.ne.s32.totalorder %s4059_s13, %s3643_s28  ;;  %p3647_p12 = scmp.lt.u32.totalorder %s3643_s28, %s4059_s13 }
 0x610   :  { %p3649_p13 = pnand %p3647_p12, %p3644_p11 }
 0x612   :  { %3652 = shalt.err (!%p3649_p13)
}
 0x613   :  { %2643 = dma.vmem_to_hbm [thread:$0]  %s2641_s15, 32, %s4059_s13, [#allocation4]  }
 0x614   :  { %3667 = dma.done.wait [#allocation4], 32  }
 0x615   :  { %3668 = vsyncadd [#allocation4], 4294967264 }
 0x616   :  { %2647 = vsyncpa [#allocation3], 1 }
 0x617   :  { %2648 = vsyncpa [#allocation6], 1 }
 0x618   :  { %2649 = vsyncpa [#allocation9], 1 }
 0x619   :  { %2650 = vsyncpa [#allocation12], 1 }
 0x61a   :  { %2651 = vsyncpa [#allocation15], 1 }
 0x61b   :  { %2652 = vsyncpa [#allocation18], 1 }
 0x61c   :  { %2653 = vsyncpa [#allocation21], 1 }
 0x61d   :  { %2654 = vsyncpa [#allocation4], 1 }

</bundles_post_ra>
